<compile_context>
chip_gen: v6e
topology: v6e:2x2x1
jax: 0.10.0
libtpu: 0.0.40
codegen_flags: <defaults>
</compile_context>

<pallas_src>
import jax
import jax.numpy as jnp
from jax.experimental import pallas as pl
from jax.experimental.pallas import tpu as pltpu

HIDDEN = 51          # AttentiveFP hidden_channels
H_PAD = 64           # zero-padded hidden width (lane/K friendly)
NUM_TIMESTEPS = 7    # AttentiveFP num_timesteps (num_layers=1 -> no extra GAT layers)


def _leaky(v, slope=0.01):
    return jnp.where(v >= 0.0, v, slope * v)


def _elu(v):
    return jnp.where(v > 0.0, v, jnp.exp(v) - 1.0)


def attentive_fp_kernel(
    x_ref, ea_ref, src_col_ref, dst_col_ref, dst_row_ref, bat_col_ref, bat_row_ref,
    w_lin1_ref, b_lin1_ref,
    w_ge1x_ref, w_ge1e_ref, w_ge2_ref, att_l_ref, att_r_ref, b_gate_ref,
    g1_wih_ref, g1_whh_ref, g1_bih_ref, g1_bhh_ref,
    w_mol_ref, att_src_ref, w_att_dst_ref, b_mol_ref,
    mg_wih_ref, mg_whh_ref, mg_bih_ref, mg_bhh_ref,
    w_lin2_ref, b_lin2_ref,
    out_ref,
):
    f32 = jnp.float32
    bf16 = jnp.bfloat16

    N = x_ref.shape[0]
    E = src_col_ref.shape[0]
    B = out_ref.shape[0]
    H = w_lin1_ref.shape[1]          # padded hidden width

    def mmw(a, b):
        # dense weight matmul: bf16 operands, f32 MXU accumulation
        return jnp.dot(a.astype(bf16), b.astype(bf16), preferred_element_type=f32)

    def mm(a, b):
        # exact f32 matmul (one-hot gather / scatter / pooling)
        return jnp.dot(a, b, preferred_element_type=f32)

    # ---- build gather/scatter one-hots in-kernel (VPU iota compares, no HBM traffic) ----
    iota_en = jax.lax.broadcasted_iota(jnp.int32, (E, N), 1)
    S = (src_col_ref[...] == iota_en).astype(f32)    # [E, N] gather source node -> edge
    Dg = (dst_col_ref[...] == iota_en).astype(f32)   # [E, N] gather target node -> edge
    Dt = (dst_row_ref[...] ==
          jax.lax.broadcasted_iota(jnp.int32, (N, E), 0)).astype(f32)  # [N, E] scatter-add
    PT = (bat_col_ref[...] ==
          jax.lax.broadcasted_iota(jnp.int32, (N, B), 1)).astype(f32)  # [N, B] graph -> node
    P = (bat_row_ref[...] ==
         jax.lax.broadcasted_iota(jnp.int32, (B, N), 0)).astype(f32)   # [B, N] node -> graph

    # ---- fused-gate torch.nn.GRUCell (gate order r, z, n), packed [Hin, 3H] weights ----
    def gru(inp, hid, wih, whh, bih, bhh):
        gi = mmw(inp, wih) + bih                      # [*, 3H]
        gh = mmw(hid, whh) + bhh                      # [*, 3H]
        r = jax.nn.sigmoid(gi[:, 0:H] + gh[:, 0:H])
        z = jax.nn.sigmoid(gi[:, H:2 * H] + gh[:, H:2 * H])
        n = jnp.tanh(gi[:, 2 * H:3 * H] + r * gh[:, 2 * H:3 * H])
        return (1.0 - z) * n + z * hid

    x = x_ref[...]
    ea = ea_ref[...]

    # ---- Atom embedding: x = leaky_relu(lin1(x)) ----
    xh = _leaky(mmw(x, w_lin1_ref[...]) + b_lin1_ref[...])                # [N, H]

    # ---- GATEConv (edge attention, 'add' aggregation) ----
    x_j = mm(S, xh)                                                       # [E, H]
    x_i = mm(Dg, xh)                                                      # [E, H]
    xj_t = _leaky(mmw(x_j, w_ge1x_ref[...]) + mmw(ea, w_ge1e_ref[...]))   # [E, H]
    alpha = _leaky(mmw(xj_t, att_l_ref[...]) + mmw(x_i, att_r_ref[...]))  # [E, 1]
    # segment softmax over edges grouped by target node; normalize AFTER the
    # scatter-add (identical for sum aggregation, removes the edge-gather of the denom)
    e_exp = jnp.exp(alpha - jnp.max(alpha, axis=0, keepdims=True))        # [E, 1]
    # TODO(synk): dropout implemented as eval-mode identity (no RNG).
    msg = mmw(x_j, w_ge2_ref[...]) * e_exp                                # [E, H]
    num_h = mm(Dt, msg)                                                   # [N, H]
    den_n = mm(Dt, e_exp)                                                 # [N, 1]
    h = _elu(num_h / (den_n + 1e-16) + b_gate_ref[...])                   # [N, H]
    xh = jnp.maximum(
        gru(h, xh, g1_wih_ref[...], g1_whh_ref[...],
            g1_bih_ref[...], g1_bhh_ref[...]), 0.0)                       # [N, H]

    # ---- Molecule embedding: global_add_pool + GATConv readout timesteps ----
    out = jnp.maximum(mm(P, xh), 0.0)                                     # [B, H]
    # loop-invariant values hoisted out of the timestep loop
    x_src_t = mmw(xh, w_mol_ref[...])                                     # [N, H]
    a_src = mmw(x_src_t, att_src_ref[...])                                # [N, 1]
    w_att_dst = w_att_dst_ref[...]                                        # [H, 1] (= w_mol @ att_dst)
    b_mol = b_mol_ref[...]
    mg_wih = mg_wih_ref[...]
    mg_whh = mg_whh_ref[...]
    mg_bih = mg_bih_ref[...]
    mg_bhh = mg_bhh_ref[...]

    def timestep(_, out_c):
        a_dst = mmw(out_c, w_att_dst)                                     # [B, 1]
        a_edge = _leaky(a_src + mm(PT, a_dst))                            # [N, 1]
        ex = jnp.exp(a_edge - jnp.max(a_edge, axis=0, keepdims=True))     # [N, 1]
        num_g = mm(P, x_src_t * ex)                                       # [B, H]
        den_g = mm(P, ex)                                                 # [B, 1]
        hmol = _elu(num_g / (den_g + 1e-16) + b_mol)                      # [B, H]
        return jnp.maximum(gru(hmol, out_c, mg_wih, mg_whh, mg_bih, mg_bhh), 0.0)

    out = jax.lax.fori_loop(0, NUM_TIMESTEPS, timestep, out)

    # ---- Predictor: lin2 ----
    out_ref[...] = mmw(out, w_lin2_ref[...]) + b_lin2_ref[...]            # [B, 1]


def init_params(key, in_features=92, hidden=HIDDEN, out_features=1, edge_dim=10,
                h_pad=H_PAD):
    """Deterministic synthetic parameters with exact AttentiveFP shapes, zero-padded
    from hidden=51 to h_pad=64 (padded rows/cols are zero => identical math)."""
    def nrm(k, shape, scale=0.1):
        return (scale * jax.random.normal(k, shape)).astype(jnp.float32)

    def pad_to(a, shape):
        return jnp.pad(a, [(0, t - s) for s, t in zip(a.shape, shape)])

    ks = iter(jax.random.split(key, 32))
    p = {}
    # AttentiveFP.lin1 : Linear(92 -> 51)
    p["w_lin1"] = pad_to(nrm(next(ks), (in_features, hidden)), (in_features, h_pad))
    p["b_lin1"] = pad_to(nrm(next(ks), (1, hidden)), (1, h_pad))
    # GATEConv: lin1 (61 -> 51, no bias) split into node-/edge- parts, lin2, att, bias
    w_ge1 = nrm(next(ks), (hidden, hidden + edge_dim))            # torch [out, in]
    p["w_ge1x"] = pad_to(w_ge1[:, :hidden].T, (h_pad, h_pad))
    p["w_ge1e"] = pad_to(w_ge1[:, hidden:].T, (edge_dim, h_pad))
    p["w_ge2"] = pad_to(nrm(next(ks), (hidden, hidden)).T, (h_pad, h_pad))
    p["att_l"] = pad_to(nrm(next(ks), (hidden, 1)), (h_pad, 1))
    p["att_r"] = pad_to(nrm(next(ks), (hidden, 1)), (h_pad, 1))
    p["b_gate"] = pad_to(nrm(next(ks), (1, hidden)), (1, h_pad))

    def gru_params(k):
        # torch.nn.GRUCell (gate order r, z, n), packed for a single fused matmul
        # per operand: W -> [h_pad, 3*h_pad], b -> [1, 3*h_pad].
        k1, k2, k3, k4 = jax.random.split(k, 4)
        wih = nrm(k1, (3 * hidden, hidden))                       # torch [3H, input]
        whh = nrm(k2, (3 * hidden, hidden))
        bih = nrm(k3, (3 * hidden,))
        bhh = nrm(k4, (3 * hidden,))

        def pack_w(w):
            packed = jnp.zeros((h_pad, 3 * h_pad), jnp.float32)
            for g in range(3):
                blk = w[g * hidden:(g + 1) * hidden, :].T         # [H_in, H_out]
                packed = packed.at[:hidden, g * h_pad:g * h_pad + hidden].set(blk)
            return packed

        def pack_b(b):
            packed = jnp.zeros((1, 3 * h_pad), jnp.float32)
            for g in range(3):
                packed = packed.at[0, g * h_pad:g * h_pad + hidden].set(
                    b[g * hidden:(g + 1) * hidden])
            return packed

        return pack_w(wih), pack_w(whh), pack_b(bih), pack_b(bhh)

    p["g1_wih"], p["g1_whh"], p["g1_bih"], p["g1_bhh"] = gru_params(next(ks))
    # mol_conv: GATConv(51 -> 51, heads=1, no self-loops)
    p["w_mol"] = pad_to(nrm(next(ks), (hidden, hidden)).T, (h_pad, h_pad))
    p["att_src"] = pad_to(nrm(next(ks), (hidden, 1)), (h_pad, 1))
    p["att_dst"] = pad_to(nrm(next(ks), (hidden, 1)), (h_pad, 1))
    p["b_mol"] = pad_to(nrm(next(ks), (1, hidden)), (1, h_pad))
    p["mg_wih"], p["mg_whh"], p["mg_bih"], p["mg_bhh"] = gru_params(next(ks))
    # lin2 : Linear(51 -> 1)
    p["w_lin2"] = pad_to(nrm(next(ks), (out_features, hidden)).T, (h_pad, out_features))
    p["b_lin2"] = nrm(next(ks), (1, out_features))
    return p


def attention_conv_net_forward(params, x, edge_index, edge_attr, batch, num_graphs):
    N = x.shape[0]
    E = edge_index.shape[1]
    B = num_graphs
    f32 = jnp.float32

    # Only tiny int32 index vectors go to the kernel; one-hots are built on-chip.
    src_col = edge_index[0].astype(jnp.int32).reshape(E, 1)
    dst_col = edge_index[1].astype(jnp.int32).reshape(E, 1)
    dst_row = edge_index[1].astype(jnp.int32).reshape(1, E)
    bat_col = batch.astype(jnp.int32).reshape(N, 1)
    bat_row = batch.astype(jnp.int32).reshape(1, N)

    # timestep-invariant parameter product hoisted all the way to the wrapper
    w_att_dst = jnp.dot(params["w_mol"], params["att_dst"])       # [H_pad, 1]

    args = (
        x.astype(f32), edge_attr.astype(f32),
        src_col, dst_col, dst_row, bat_col, bat_row,
        params["w_lin1"], params["b_lin1"],
        params["w_ge1x"], params["w_ge1e"], params["w_ge2"],
        params["att_l"], params["att_r"], params["b_gate"],
        params["g1_wih"], params["g1_whh"], params["g1_bih"], params["g1_bhh"],
        params["w_mol"], params["att_src"], w_att_dst, params["b_mol"],
        params["mg_wih"], params["mg_whh"], params["mg_bih"], params["mg_bhh"],
        params["w_lin2"], params["b_lin2"],
    )
    out_features = params["w_lin2"].shape[1]

    # Advisory cost estimate (rough) so XLA can schedule around this small call.
    H = H_PAD
    flops = 2 * (
        N * x.shape[1] * H                       # lin1
        + 2 * E * N * H                          # edge gathers
        + E * H * H + E * edge_attr.shape[1] * H # GATEConv lin1
        + 2 * E * H + E * H * H                  # att + lin2
        + E * N * (H + 1)                        # scatter num + den
        + 2 * N * H * 3 * H                      # node GRU
        + N * B * H + N * H * H + N * H          # pool + x_src_t + a_src
        + NUM_TIMESTEPS * (B * H + N * B + N * B * (H + 1) + 2 * B * H * 3 * H)
        + B * H * out_features
    )
    transcendentals = E + 7 * N * H + NUM_TIMESTEPS * (N + 7 * B * H)
    bytes_accessed = int(sum(int(a.size) * a.dtype.itemsize for a in args)
                         + B * out_features * 4)

    vmem = pltpu.MemorySpace.VMEM
    return pl.pallas_call(
        attentive_fp_kernel,
        out_shape=jax.ShapeDtypeStruct((B, out_features), f32),
        in_specs=[pl.BlockSpec(memory_space=vmem)] * len(args),
        out_specs=pl.BlockSpec(memory_space=vmem),
        cost_estimate=pl.CostEstimate(flops=int(flops),
                                      transcendentals=int(transcendentals),
                                      bytes_accessed=bytes_accessed),
    )(*args)


if __name__ == "__main__":
    N, E, B = 16, 32, 2            # nodes, edges, graphs
    IN_FEATURES, EDGE_DIM = 92, 10

    key = jax.random.PRNGKey(0)
    k_x, k_ea, k_s0, k_d0, k_s1, k_d1, k_p = jax.random.split(key, 7)

    x = jax.random.normal(k_x, (N, IN_FEATURES), dtype=jnp.float32)
    edge_attr = jax.random.normal(k_ea, (E, EDGE_DIM), dtype=jnp.float32)
    # edges kept within each graph (nodes 0..7 -> graph 0, 8..15 -> graph 1)
    src = jnp.concatenate([jax.random.randint(k_s0, (E // 2,), 0, N // 2),
                           jax.random.randint(k_s1, (E // 2,), N // 2, N)])
    dst = jnp.concatenate([jax.random.randint(k_d0, (E // 2,), 0, N // 2),
                           jax.random.randint(k_d1, (E // 2,), N // 2, N)])
    edge_index = jnp.stack([src, dst]).astype(jnp.int32)
    batch = jnp.concatenate([jnp.zeros(N // 2, jnp.int32),
                             jnp.ones(N // 2, jnp.int32)])

    params = init_params(k_p, in_features=IN_FEATURES, hidden=HIDDEN,
                         out_features=1, edge_dim=EDGE_DIM)

    out = attention_conv_net_forward(params, x, edge_index, edge_attr, batch, B)
    jax.block_until_ready(out)
    assert out.shape == (B, 1)
    print("KERNEL_OK")
</pallas_src>

<mosaic_0001>
module attributes {stable_mosaic.version = 11 : i64} {
  func.func @attentive_fp_kernel(%arg0: memref<16x92xf32, #tpu.memory_space<vmem>>, %arg1: memref<32x10xf32, #tpu.memory_space<vmem>>, %arg2: memref<32x1xi32, #tpu.memory_space<vmem>>, %arg3: memref<32x1xi32, #tpu.memory_space<vmem>>, %arg4: memref<1x32xi32, #tpu.memory_space<vmem>>, %arg5: memref<16x1xi32, #tpu.memory_space<vmem>>, %arg6: memref<1x16xi32, #tpu.memory_space<vmem>>, %arg7: memref<92x64xf32, #tpu.memory_space<vmem>>, %arg8: memref<1x64xf32, #tpu.memory_space<vmem>>, %arg9: memref<64x64xf32, #tpu.memory_space<vmem>>, %arg10: memref<10x64xf32, #tpu.memory_space<vmem>>, %arg11: memref<64x64xf32, #tpu.memory_space<vmem>>, %arg12: memref<64x1xf32, #tpu.memory_space<vmem>>, %arg13: memref<64x1xf32, #tpu.memory_space<vmem>>, %arg14: memref<1x64xf32, #tpu.memory_space<vmem>>, %arg15: memref<64x192xf32, #tpu.memory_space<vmem>>, %arg16: memref<64x192xf32, #tpu.memory_space<vmem>>, %arg17: memref<1x192xf32, #tpu.memory_space<vmem>>, %arg18: memref<1x192xf32, #tpu.memory_space<vmem>>, %arg19: memref<64x64xf32, #tpu.memory_space<vmem>>, %arg20: memref<64x1xf32, #tpu.memory_space<vmem>>, %arg21: memref<64x1xf32, #tpu.memory_space<vmem>>, %arg22: memref<1x64xf32, #tpu.memory_space<vmem>>, %arg23: memref<64x192xf32, #tpu.memory_space<vmem>>, %arg24: memref<64x192xf32, #tpu.memory_space<vmem>>, %arg25: memref<1x192xf32, #tpu.memory_space<vmem>>, %arg26: memref<1x192xf32, #tpu.memory_space<vmem>>, %arg27: memref<64x1xf32, #tpu.memory_space<vmem>>, %arg28: memref<1x1xf32, #tpu.memory_space<vmem>>, %arg29: memref<2x1xf32, #tpu.memory_space<vmem>>) attributes {dimension_semantics = [], scalar_prefetch = 0 : i64, scratch_operands = 0 : i64, tpu.core_type = #tpu.core_type<tc>} {
    %0 = tpu.iota {dimensions = array<i32: 1>} : vector<32x16xi32>
    %c0 = arith.constant 0 : index
    %c0_0 = arith.constant 0 : index
    %1 = vector.load %arg2[%c0, %c0_0] : memref<32x1xi32, #tpu.memory_space<vmem>>, vector<32x1xi32>
    %2 = vector.broadcast %1 : vector<32x1xi32> to vector<32x16xi32>
    %3 = arith.cmpi eq, %2, %0 : vector<32x16xi32>
    %4 = arith.extui %3 : vector<32x16xi1> to vector<32x16xi32>
    %5 = arith.sitofp %4 : vector<32x16xi32> to vector<32x16xf32>
    %c0_1 = arith.constant 0 : index
    %c0_2 = arith.constant 0 : index
    %6 = vector.load %arg3[%c0_1, %c0_2] : memref<32x1xi32, #tpu.memory_space<vmem>>, vector<32x1xi32>
    %7 = vector.broadcast %6 : vector<32x1xi32> to vector<32x16xi32>
    %8 = arith.cmpi eq, %7, %0 : vector<32x16xi32>
    %9 = arith.extui %8 : vector<32x16xi1> to vector<32x16xi32>
    %10 = arith.sitofp %9 : vector<32x16xi32> to vector<32x16xf32>
    %c0_3 = arith.constant 0 : index
    %c0_4 = arith.constant 0 : index
    %11 = vector.load %arg4[%c0_3, %c0_4] : memref<1x32xi32, #tpu.memory_space<vmem>>, vector<1x32xi32>
    %12 = tpu.iota {dimensions = array<i32: 0>} : vector<16x32xi32>
    %13 = vector.broadcast %11 : vector<1x32xi32> to vector<16x32xi32>
    %14 = arith.cmpi eq, %13, %12 : vector<16x32xi32>
    %15 = arith.extui %14 : vector<16x32xi1> to vector<16x32xi32>
    %16 = arith.sitofp %15 : vector<16x32xi32> to vector<16x32xf32>
    %c0_5 = arith.constant 0 : index
    %c0_6 = arith.constant 0 : index
    %17 = vector.load %arg5[%c0_5, %c0_6] : memref<16x1xi32, #tpu.memory_space<vmem>>, vector<16x1xi32>
    %18 = tpu.iota {dimensions = array<i32: 1>} : vector<16x2xi32>
    %19 = vector.broadcast %17 : vector<16x1xi32> to vector<16x2xi32>
    %20 = arith.cmpi eq, %19, %18 : vector<16x2xi32>
    %21 = arith.extui %20 : vector<16x2xi1> to vector<16x2xi32>
    %22 = arith.sitofp %21 : vector<16x2xi32> to vector<16x2xf32>
    %c0_7 = arith.constant 0 : index
    %c0_8 = arith.constant 0 : index
    %23 = vector.load %arg6[%c0_7, %c0_8] : memref<1x16xi32, #tpu.memory_space<vmem>>, vector<1x16xi32>
    %24 = tpu.iota {dimensions = array<i32: 0>} : vector<2x16xi32>
    %25 = vector.broadcast %23 : vector<1x16xi32> to vector<2x16xi32>
    %26 = arith.cmpi eq, %25, %24 : vector<2x16xi32>
    %27 = arith.extui %26 : vector<2x16xi1> to vector<2x16xi32>
    %28 = arith.sitofp %27 : vector<2x16xi32> to vector<2x16xf32>
    %c0_9 = arith.constant 0 : index
    %c0_10 = arith.constant 0 : index
    %29 = vector.load %arg0[%c0_9, %c0_10] : memref<16x92xf32, #tpu.memory_space<vmem>>, vector<16x92xf32>
    %c0_11 = arith.constant 0 : index
    %c0_12 = arith.constant 0 : index
    %30 = vector.load %arg1[%c0_11, %c0_12] : memref<32x10xf32, #tpu.memory_space<vmem>>, vector<32x10xf32>
    %c0_13 = arith.constant 0 : index
    %c0_14 = arith.constant 0 : index
    %31 = vector.load %arg7[%c0_13, %c0_14] : memref<92x64xf32, #tpu.memory_space<vmem>>, vector<92x64xf32>
    %32 = arith.truncf %29 : vector<16x92xf32> to vector<16x92xbf16>
    %33 = arith.truncf %31 : vector<92x64xf32> to vector<92x64xbf16>
    %cst = arith.constant dense<0.000000e+00> : vector<16x64xf32>
    %34 = tpu.matmul %32, %33, %cst {dimension_numbers = #tpu.dot_dimension_numbers<[1], [0], [0], [1], [0, 0, 1, 1], [], []>} : vector<16x92xbf16>, vector<92x64xbf16>, vector<16x64xf32> -> vector<16x64xf32>
    %c0_15 = arith.constant 0 : index
    %c0_16 = arith.constant 0 : index
    %35 = vector.load %arg8[%c0_15, %c0_16] : memref<1x64xf32, #tpu.memory_space<vmem>>, vector<1x64xf32>
    %36 = vector.broadcast %35 : vector<1x64xf32> to vector<16x64xf32>
    %37 = arith.addf %34, %36 : vector<16x64xf32>
    %cst_17 = arith.constant 0.000000e+00 : f32
    %38 = vector.broadcast %cst_17 : f32 to vector<16x64xf32>
    %39 = arith.cmpf oge, %37, %38 : vector<16x64xf32>
    %cst_18 = arith.constant 0.00999999977 : f32
    %40 = vector.broadcast %cst_18 : f32 to vector<16x64xf32>
    %41 = arith.mulf %40, %37 : vector<16x64xf32>
    %42 = arith.select %39, %37, %41 : vector<16x64xi1>, vector<16x64xf32>
    %cst_19 = arith.constant dense<0.000000e+00> : vector<32x64xf32>
    %43 = tpu.matmul %5, %42, %cst_19 {dimension_numbers = #tpu.dot_dimension_numbers<[1], [0], [0], [1], [0, 0, 1, 1], [], []>} : vector<32x16xf32>, vector<16x64xf32>, vector<32x64xf32> -> vector<32x64xf32>
    %cst_20 = arith.constant dense<0.000000e+00> : vector<32x64xf32>
    %44 = tpu.matmul %10, %42, %cst_20 {dimension_numbers = #tpu.dot_dimension_numbers<[1], [0], [0], [1], [0, 0, 1, 1], [], []>} : vector<32x16xf32>, vector<16x64xf32>, vector<32x64xf32> -> vector<32x64xf32>
    %c0_21 = arith.constant 0 : index
    %c0_22 = arith.constant 0 : index
    %45 = vector.load %arg9[%c0_21, %c0_22] : memref<64x64xf32, #tpu.memory_space<vmem>>, vector<64x64xf32>
    %46 = arith.truncf %43 : vector<32x64xf32> to vector<32x64xbf16>
    %47 = arith.truncf %45 : vector<64x64xf32> to vector<64x64xbf16>
    %cst_23 = arith.constant dense<0.000000e+00> : vector<32x64xf32>
    %48 = tpu.matmul %46, %47, %cst_23 {dimension_numbers = #tpu.dot_dimension_numbers<[1], [0], [0], [1], [0, 0, 1, 1], [], []>} : vector<32x64xbf16>, vector<64x64xbf16>, vector<32x64xf32> -> vector<32x64xf32>
    %c0_24 = arith.constant 0 : index
    %c0_25 = arith.constant 0 : index
    %49 = vector.load %arg10[%c0_24, %c0_25] : memref<10x64xf32, #tpu.memory_space<vmem>>, vector<10x64xf32>
    %50 = arith.truncf %30 : vector<32x10xf32> to vector<32x10xbf16>
    %51 = arith.truncf %49 : vector<10x64xf32> to vector<10x64xbf16>
    %cst_26 = arith.constant dense<0.000000e+00> : vector<32x64xf32>
    %52 = tpu.matmul %50, %51, %cst_26 {dimension_numbers = #tpu.dot_dimension_numbers<[1], [0], [0], [1], [0, 0, 1, 1], [], []>} : vector<32x10xbf16>, vector<10x64xbf16>, vector<32x64xf32> -> vector<32x64xf32>
    %53 = arith.addf %48, %52 : vector<32x64xf32>
    %cst_27 = arith.constant 0.000000e+00 : f32
    %54 = vector.broadcast %cst_27 : f32 to vector<32x64xf32>
    %55 = arith.cmpf oge, %53, %54 : vector<32x64xf32>
    %cst_28 = arith.constant 0.00999999977 : f32
    %56 = vector.broadcast %cst_28 : f32 to vector<32x64xf32>
    %57 = arith.mulf %56, %53 : vector<32x64xf32>
    %58 = arith.select %55, %53, %57 : vector<32x64xi1>, vector<32x64xf32>
    %c0_29 = arith.constant 0 : index
    %c0_30 = arith.constant 0 : index
    %59 = vector.load %arg12[%c0_29, %c0_30] : memref<64x1xf32, #tpu.memory_space<vmem>>, vector<64x1xf32>
    %60 = arith.truncf %58 : vector<32x64xf32> to vector<32x64xbf16>
    %61 = arith.truncf %59 : vector<64x1xf32> to vector<64x1xbf16>
    %cst_31 = arith.constant dense<0.000000e+00> : vector<32x1xf32>
    %62 = tpu.matmul %60, %61, %cst_31 {dimension_numbers = #tpu.dot_dimension_numbers<[1], [0], [0], [1], [0, 0, 1, 1], [], []>} : vector<32x64xbf16>, vector<64x1xbf16>, vector<32x1xf32> -> vector<32x1xf32>
    %c0_32 = arith.constant 0 : index
    %c0_33 = arith.constant 0 : index
    %63 = vector.load %arg13[%c0_32, %c0_33] : memref<64x1xf32, #tpu.memory_space<vmem>>, vector<64x1xf32>
    %64 = arith.truncf %44 : vector<32x64xf32> to vector<32x64xbf16>
    %65 = arith.truncf %63 : vector<64x1xf32> to vector<64x1xbf16>
    %cst_34 = arith.constant dense<0.000000e+00> : vector<32x1xf32>
    %66 = tpu.matmul %64, %65, %cst_34 {dimension_numbers = #tpu.dot_dimension_numbers<[1], [0], [0], [1], [0, 0, 1, 1], [], []>} : vector<32x64xbf16>, vector<64x1xbf16>, vector<32x1xf32> -> vector<32x1xf32>
    %67 = arith.addf %62, %66 : vector<32x1xf32>
    %cst_35 = arith.constant 0.000000e+00 : f32
    %68 = vector.broadcast %cst_35 : f32 to vector<32x1xf32>
    %69 = arith.cmpf oge, %67, %68 : vector<32x1xf32>
    %cst_36 = arith.constant 0.00999999977 : f32
    %70 = vector.broadcast %cst_36 : f32 to vector<32x1xf32>
    %71 = arith.mulf %70, %67 : vector<32x1xf32>
    %72 = arith.select %69, %67, %71 : vector<32x1xi1>, vector<32x1xf32>
    %cst_37 = arith.constant dense<0xFF800000> : vector<1xf32>
    %73 = vector.multi_reduction <maximumf>, %72, %cst_37 [0] : vector<32x1xf32> to vector<1xf32>
    %74 = vector.shape_cast %73 : vector<1xf32> to vector<1x1xf32>
    %75 = vector.broadcast %74 : vector<1x1xf32> to vector<32x1xf32>
    %76 = arith.subf %72, %75 : vector<32x1xf32>
    %77 = math.exp %76 : vector<32x1xf32>
    %c0_38 = arith.constant 0 : index
    %c0_39 = arith.constant 0 : index
    %78 = vector.load %arg11[%c0_38, %c0_39] : memref<64x64xf32, #tpu.memory_space<vmem>>, vector<64x64xf32>
    %79 = arith.truncf %43 : vector<32x64xf32> to vector<32x64xbf16>
    %80 = arith.truncf %78 : vector<64x64xf32> to vector<64x64xbf16>
    %cst_40 = arith.constant dense<0.000000e+00> : vector<32x64xf32>
    %81 = tpu.matmul %79, %80, %cst_40 {dimension_numbers = #tpu.dot_dimension_numbers<[1], [0], [0], [1], [0, 0, 1, 1], [], []>} : vector<32x64xbf16>, vector<64x64xbf16>, vector<32x64xf32> -> vector<32x64xf32>
    %82 = vector.broadcast %77 : vector<32x1xf32> to vector<32x64xf32>
    %83 = arith.mulf %81, %82 : vector<32x64xf32>
    %cst_41 = arith.constant dense<0.000000e+00> : vector<16x64xf32>
    %84 = tpu.matmul %16, %83, %cst_41 {dimension_numbers = #tpu.dot_dimension_numbers<[1], [0], [0], [1], [0, 0, 1, 1], [], []>} : vector<16x32xf32>, vector<32x64xf32>, vector<16x64xf32> -> vector<16x64xf32>
    %cst_42 = arith.constant dense<0.000000e+00> : vector<16x1xf32>
    %85 = tpu.matmul %16, %77, %cst_42 {dimension_numbers = #tpu.dot_dimension_numbers<[1], [0], [0], [1], [0, 0, 1, 1], [], []>} : vector<16x32xf32>, vector<32x1xf32>, vector<16x1xf32> -> vector<16x1xf32>
    %cst_43 = arith.constant 1.000000e-16 : f32
    %86 = vector.broadcast %cst_43 : f32 to vector<16x1xf32>
    %87 = arith.addf %85, %86 : vector<16x1xf32>
    %88 = vector.broadcast %87 : vector<16x1xf32> to vector<16x64xf32>
    %89 = arith.divf %84, %88 : vector<16x64xf32>
    %c0_44 = arith.constant 0 : index
    %c0_45 = arith.constant 0 : index
    %90 = vector.load %arg14[%c0_44, %c0_45] : memref<1x64xf32, #tpu.memory_space<vmem>>, vector<1x64xf32>
    %91 = vector.broadcast %90 : vector<1x64xf32> to vector<16x64xf32>
    %92 = arith.addf %89, %91 : vector<16x64xf32>
    %cst_46 = arith.constant 0.000000e+00 : f32
    %93 = vector.broadcast %cst_46 : f32 to vector<16x64xf32>
    %94 = arith.cmpf ogt, %92, %93 : vector<16x64xf32>
    %95 = math.exp %92 : vector<16x64xf32>
    %cst_47 = arith.constant 1.000000e+00 : f32
    %96 = vector.broadcast %cst_47 : f32 to vector<16x64xf32>
    %97 = arith.subf %95, %96 : vector<16x64xf32>
    %98 = arith.select %94, %92, %97 : vector<16x64xi1>, vector<16x64xf32>
    %c0_48 = arith.constant 0 : index
    %c0_49 = arith.constant 0 : index
    %99 = vector.load %arg15[%c0_48, %c0_49] : memref<64x192xf32, #tpu.memory_space<vmem>>, vector<64x192xf32>
    %c0_50 = arith.constant 0 : index
    %c0_51 = arith.constant 0 : index
    %100 = vector.load %arg16[%c0_50, %c0_51] : memref<64x192xf32, #tpu.memory_space<vmem>>, vector<64x192xf32>
    %c0_52 = arith.constant 0 : index
    %c0_53 = arith.constant 0 : index
    %101 = vector.load %arg17[%c0_52, %c0_53] : memref<1x192xf32, #tpu.memory_space<vmem>>, vector<1x192xf32>
    %c0_54 = arith.constant 0 : index
    %c0_55 = arith.constant 0 : index
    %102 = vector.load %arg18[%c0_54, %c0_55] : memref<1x192xf32, #tpu.memory_space<vmem>>, vector<1x192xf32>
    %103 = arith.truncf %98 : vector<16x64xf32> to vector<16x64xbf16>
    %104 = arith.truncf %99 : vector<64x192xf32> to vector<64x192xbf16>
    %cst_56 = arith.constant dense<0.000000e+00> : vector<16x192xf32>
    %105 = tpu.matmul %103, %104, %cst_56 {dimension_numbers = #tpu.dot_dimension_numbers<[1], [0], [0], [1], [0, 0, 1, 1], [], []>} : vector<16x64xbf16>, vector<64x192xbf16>, vector<16x192xf32> -> vector<16x192xf32>
    %106 = vector.broadcast %101 : vector<1x192xf32> to vector<16x192xf32>
    %107 = arith.addf %105, %106 : vector<16x192xf32>
    %108 = arith.truncf %42 : vector<16x64xf32> to vector<16x64xbf16>
    %109 = arith.truncf %100 : vector<64x192xf32> to vector<64x192xbf16>
    %cst_57 = arith.constant dense<0.000000e+00> : vector<16x192xf32>
    %110 = tpu.matmul %108, %109, %cst_57 {dimension_numbers = #tpu.dot_dimension_numbers<[1], [0], [0], [1], [0, 0, 1, 1], [], []>} : vector<16x64xbf16>, vector<64x192xbf16>, vector<16x192xf32> -> vector<16x192xf32>
    %111 = vector.broadcast %102 : vector<1x192xf32> to vector<16x192xf32>
    %112 = arith.addf %110, %111 : vector<16x192xf32>
    %113 = vector.extract_strided_slice %107 {offsets = [0, 0], sizes = [16, 64], strides = [1, 1]} : vector<16x192xf32> to vector<16x64xf32>
    %114 = vector.extract_strided_slice %112 {offsets = [0, 0], sizes = [16, 64], strides = [1, 1]} : vector<16x192xf32> to vector<16x64xf32>
    %115 = arith.addf %113, %114 : vector<16x64xf32>
    %116 = arith.negf %115 : vector<16x64xf32>
    %117 = math.exp %116 : vector<16x64xf32>
    %cst_58 = arith.constant 1.000000e+00 : f32
    %118 = vector.broadcast %cst_58 : f32 to vector<16x64xf32>
    %119 = arith.addf %118, %117 : vector<16x64xf32>
    %120 = arith.divf %118, %119 : vector<16x64xf32>
    %121 = vector.extract_strided_slice %107 {offsets = [0, 64], sizes = [16, 64], strides = [1, 1]} : vector<16x192xf32> to vector<16x64xf32>
    %122 = vector.extract_strided_slice %112 {offsets = [0, 64], sizes = [16, 64], strides = [1, 1]} : vector<16x192xf32> to vector<16x64xf32>
    %123 = arith.addf %121, %122 : vector<16x64xf32>
    %124 = arith.negf %123 : vector<16x64xf32>
    %125 = math.exp %124 : vector<16x64xf32>
    %cst_59 = arith.constant 1.000000e+00 : f32
    %126 = vector.broadcast %cst_59 : f32 to vector<16x64xf32>
    %127 = arith.addf %126, %125 : vector<16x64xf32>
    %128 = arith.divf %126, %127 : vector<16x64xf32>
    %129 = vector.extract_strided_slice %107 {offsets = [0, 128], sizes = [16, 64], strides = [1, 1]} : vector<16x192xf32> to vector<16x64xf32>
    %130 = vector.extract_strided_slice %112 {offsets = [0, 128], sizes = [16, 64], strides = [1, 1]} : vector<16x192xf32> to vector<16x64xf32>
    %131 = arith.mulf %120, %130 : vector<16x64xf32>
    %132 = arith.addf %129, %131 : vector<16x64xf32>
    %133 = math.tanh %132 : vector<16x64xf32>
    %cst_60 = arith.constant 1.000000e+00 : f32
    %134 = vector.broadcast %cst_60 : f32 to vector<16x64xf32>
    %135 = arith.subf %134, %128 : vector<16x64xf32>
    %136 = arith.mulf %135, %133 : vector<16x64xf32>
    %137 = arith.mulf %128, %42 : vector<16x64xf32>
    %138 = arith.addf %136, %137 : vector<16x64xf32>
    %cst_61 = arith.constant 0.000000e+00 : f32
    %139 = vector.broadcast %cst_61 : f32 to vector<16x64xf32>
    %140 = arith.maximumf %138, %139 : vector<16x64xf32>
    %cst_62 = arith.constant dense<0.000000e+00> : vector<2x64xf32>
    %141 = tpu.matmul %28, %140, %cst_62 {dimension_numbers = #tpu.dot_dimension_numbers<[1], [0], [0], [1], [0, 0, 1, 1], [], []>} : vector<2x16xf32>, vector<16x64xf32>, vector<2x64xf32> -> vector<2x64xf32>
    %cst_63 = arith.constant 0.000000e+00 : f32
    %142 = vector.broadcast %cst_63 : f32 to vector<2x64xf32>
    %143 = arith.maximumf %141, %142 : vector<2x64xf32>
    %c0_64 = arith.constant 0 : index
    %c0_65 = arith.constant 0 : index
    %144 = vector.load %arg19[%c0_64, %c0_65] : memref<64x64xf32, #tpu.memory_space<vmem>>, vector<64x64xf32>
    %145 = arith.truncf %140 : vector<16x64xf32> to vector<16x64xbf16>
    %146 = arith.truncf %144 : vector<64x64xf32> to vector<64x64xbf16>
    %cst_66 = arith.constant dense<0.000000e+00> : vector<16x64xf32>
    %147 = tpu.matmul %145, %146, %cst_66 {dimension_numbers = #tpu.dot_dimension_numbers<[1], [0], [0], [1], [0, 0, 1, 1], [], []>} : vector<16x64xbf16>, vector<64x64xbf16>, vector<16x64xf32> -> vector<16x64xf32>
    %c0_67 = arith.constant 0 : index
    %c0_68 = arith.constant 0 : index
    %148 = vector.load %arg20[%c0_67, %c0_68] : memref<64x1xf32, #tpu.memory_space<vmem>>, vector<64x1xf32>
    %149 = arith.truncf %147 : vector<16x64xf32> to vector<16x64xbf16>
    %150 = arith.truncf %148 : vector<64x1xf32> to vector<64x1xbf16>
    %cst_69 = arith.constant dense<0.000000e+00> : vector<16x1xf32>
    %151 = tpu.matmul %149, %150, %cst_69 {dimension_numbers = #tpu.dot_dimension_numbers<[1], [0], [0], [1], [0, 0, 1, 1], [], []>} : vector<16x64xbf16>, vector<64x1xbf16>, vector<16x1xf32> -> vector<16x1xf32>
    %c0_70 = arith.constant 0 : index
    %c0_71 = arith.constant 0 : index
    %152 = vector.load %arg21[%c0_70, %c0_71] : memref<64x1xf32, #tpu.memory_space<vmem>>, vector<64x1xf32>
    %c0_72 = arith.constant 0 : index
    %c0_73 = arith.constant 0 : index
    %153 = vector.load %arg22[%c0_72, %c0_73] : memref<1x64xf32, #tpu.memory_space<vmem>>, vector<1x64xf32>
    %c0_74 = arith.constant 0 : index
    %c0_75 = arith.constant 0 : index
    %154 = vector.load %arg23[%c0_74, %c0_75] : memref<64x192xf32, #tpu.memory_space<vmem>>, vector<64x192xf32>
    %c0_76 = arith.constant 0 : index
    %c0_77 = arith.constant 0 : index
    %155 = vector.load %arg24[%c0_76, %c0_77] : memref<64x192xf32, #tpu.memory_space<vmem>>, vector<64x192xf32>
    %c0_78 = arith.constant 0 : index
    %c0_79 = arith.constant 0 : index
    %156 = vector.load %arg25[%c0_78, %c0_79] : memref<1x192xf32, #tpu.memory_space<vmem>>, vector<1x192xf32>
    %c0_80 = arith.constant 0 : index
    %c0_81 = arith.constant 0 : index
    %157 = vector.load %arg26[%c0_80, %c0_81] : memref<1x192xf32, #tpu.memory_space<vmem>>, vector<1x192xf32>
    %c0_i32 = arith.constant 0 : i32
    %c7_i32 = arith.constant 7 : i32
    %158 = arith.addi %c0_i32, %c7_i32 : i32
    %c1_i32 = arith.constant 1 : i32
    %159 = scf.for %arg30 = %c0_i32 to %158 step %c1_i32 iter_args(%arg31 = %143) -> (vector<2x64xf32>)  : i32 {
      %168 = arith.truncf %arg31 : vector<2x64xf32> to vector<2x64xbf16>
      %169 = arith.truncf %152 : vector<64x1xf32> to vector<64x1xbf16>
      %cst_89 = arith.constant dense<0.000000e+00> : vector<2x1xf32>
      %170 = tpu.matmul %168, %169, %cst_89 {dimension_numbers = #tpu.dot_dimension_numbers<[1], [0], [0], [1], [0, 0, 1, 1], [], []>} : vector<2x64xbf16>, vector<64x1xbf16>, vector<2x1xf32> -> vector<2x1xf32>
      %cst_90 = arith.constant dense<0.000000e+00> : vector<16x1xf32>
      %171 = tpu.matmul %22, %170, %cst_90 {dimension_numbers = #tpu.dot_dimension_numbers<[1], [0], [0], [1], [0, 0, 1, 1], [], []>} : vector<16x2xf32>, vector<2x1xf32>, vector<16x1xf32> -> vector<16x1xf32>
      %172 = arith.addf %151, %171 : vector<16x1xf32>
      %cst_91 = arith.constant 0.000000e+00 : f32
      %173 = vector.broadcast %cst_91 : f32 to vector<16x1xf32>
      %174 = arith.cmpf oge, %172, %173 : vector<16x1xf32>
      %cst_92 = arith.constant 0.00999999977 : f32
      %175 = vector.broadcast %cst_92 : f32 to vector<16x1xf32>
      %176 = arith.mulf %175, %172 : vector<16x1xf32>
      %177 = arith.select %174, %172, %176 : vector<16x1xi1>, vector<16x1xf32>
      %cst_93 = arith.constant dense<0xFF800000> : vector<1xf32>
      %178 = vector.multi_reduction <maximumf>, %177, %cst_93 [0] : vector<16x1xf32> to vector<1xf32>
      %179 = vector.shape_cast %178 : vector<1xf32> to vector<1x1xf32>
      %180 = vector.broadcast %179 : vector<1x1xf32> to vector<16x1xf32>
      %181 = arith.subf %177, %180 : vector<16x1xf32>
      %182 = math.exp %181 : vector<16x1xf32>
      %183 = vector.broadcast %182 : vector<16x1xf32> to vector<16x64xf32>
      %184 = arith.mulf %147, %183 : vector<16x64xf32>
      %cst_94 = arith.constant dense<0.000000e+00> : vector<2x64xf32>
      %185 = tpu.matmul %28, %184, %cst_94 {dimension_numbers = #tpu.dot_dimension_numbers<[1], [0], [0], [1], [0, 0, 1, 1], [], []>} : vector<2x16xf32>, vector<16x64xf32>, vector<2x64xf32> -> vector<2x64xf32>
      %cst_95 = arith.constant dense<0.000000e+00> : vector<2x1xf32>
      %186 = tpu.matmul %28, %182, %cst_95 {dimension_numbers = #tpu.dot_dimension_numbers<[1], [0], [0], [1], [0, 0, 1, 1], [], []>} : vector<2x16xf32>, vector<16x1xf32>, vector<2x1xf32> -> vector<2x1xf32>
      %cst_96 = arith.constant 1.000000e-16 : f32
      %187 = vector.broadcast %cst_96 : f32 to vector<2x1xf32>
      %188 = arith.addf %186, %187 : vector<2x1xf32>
      %189 = vector.broadcast %188 : vector<2x1xf32> to vector<2x64xf32>
      %190 = arith.divf %185, %189 : vector<2x64xf32>
      %191 = vector.broadcast %153 : vector<1x64xf32> to vector<2x64xf32>
      %192 = arith.addf %190, %191 : vector<2x64xf32>
      %cst_97 = arith.constant 0.000000e+00 : f32
      %193 = vector.broadcast %cst_97 : f32 to vector<2x64xf32>
      %194 = arith.cmpf ogt, %192, %193 : vector<2x64xf32>
      %195 = math.exp %192 : vector<2x64xf32>
      %cst_98 = arith.constant 1.000000e+00 : f32
      %196 = vector.broadcast %cst_98 : f32 to vector<2x64xf32>
      %197 = arith.subf %195, %196 : vector<2x64xf32>
      %198 = arith.select %194, %192, %197 : vector<2x64xi1>, vector<2x64xf32>
      %199 = arith.truncf %198 : vector<2x64xf32> to vector<2x64xbf16>
      %200 = arith.truncf %154 : vector<64x192xf32> to vector<64x192xbf16>
      %cst_99 = arith.constant dense<0.000000e+00> : vector<2x192xf32>
      %201 = tpu.matmul %199, %200, %cst_99 {dimension_numbers = #tpu.dot_dimension_numbers<[1], [0], [0], [1], [0, 0, 1, 1], [], []>} : vector<2x64xbf16>, vector<64x192xbf16>, vector<2x192xf32> -> vector<2x192xf32>
      %202 = vector.broadcast %156 : vector<1x192xf32> to vector<2x192xf32>
      %203 = arith.addf %201, %202 : vector<2x192xf32>
      %204 = arith.truncf %arg31 : vector<2x64xf32> to vector<2x64xbf16>
      %205 = arith.truncf %155 : vector<64x192xf32> to vector<64x192xbf16>
      %cst_100 = arith.constant dense<0.000000e+00> : vector<2x192xf32>
      %206 = tpu.matmul %204, %205, %cst_100 {dimension_numbers = #tpu.dot_dimension_numbers<[1], [0], [0], [1], [0, 0, 1, 1], [], []>} : vector<2x64xbf16>, vector<64x192xbf16>, vector<2x192xf32> -> vector<2x192xf32>
      %207 = vector.broadcast %157 : vector<1x192xf32> to vector<2x192xf32>
      %208 = arith.addf %206, %207 : vector<2x192xf32>
      %209 = vector.extract_strided_slice %203 {offsets = [0, 0], sizes = [2, 64], strides = [1, 1]} : vector<2x192xf32> to vector<2x64xf32>
      %210 = vector.extract_strided_slice %208 {offsets = [0, 0], sizes = [2, 64], strides = [1, 1]} : vector<2x192xf32> to vector<2x64xf32>
      %211 = arith.addf %209, %210 : vector<2x64xf32>
      %212 = arith.negf %211 : vector<2x64xf32>
      %213 = math.exp %212 : vector<2x64xf32>
      %cst_101 = arith.constant 1.000000e+00 : f32
      %214 = vector.broadcast %cst_101 : f32 to vector<2x64xf32>
      %215 = arith.addf %214, %213 : vector<2x64xf32>
      %216 = arith.divf %214, %215 : vector<2x64xf32>
      %217 = vector.extract_strided_slice %203 {offsets = [0, 64], sizes = [2, 64], strides = [1, 1]} : vector<2x192xf32> to vector<2x64xf32>
      %218 = vector.extract_strided_slice %208 {offsets = [0, 64], sizes = [2, 64], strides = [1, 1]} : vector<2x192xf32> to vector<2x64xf32>
      %219 = arith.addf %217, %218 : vector<2x64xf32>
      %220 = arith.negf %219 : vector<2x64xf32>
      %221 = math.exp %220 : vector<2x64xf32>
      %cst_102 = arith.constant 1.000000e+00 : f32
      %222 = vector.broadcast %cst_102 : f32 to vector<2x64xf32>
      %223 = arith.addf %222, %221 : vector<2x64xf32>
      %224 = arith.divf %222, %223 : vector<2x64xf32>
      %225 = vector.extract_strided_slice %203 {offsets = [0, 128], sizes = [2, 64], strides = [1, 1]} : vector<2x192xf32> to vector<2x64xf32>
      %226 = vector.extract_strided_slice %208 {offsets = [0, 128], sizes = [2, 64], strides = [1, 1]} : vector<2x192xf32> to vector<2x64xf32>
      %227 = arith.mulf %216, %226 : vector<2x64xf32>
      %228 = arith.addf %225, %227 : vector<2x64xf32>
      %229 = math.tanh %228 : vector<2x64xf32>
      %cst_103 = arith.constant 1.000000e+00 : f32
      %230 = vector.broadcast %cst_103 : f32 to vector<2x64xf32>
      %231 = arith.subf %230, %224 : vector<2x64xf32>
      %232 = arith.mulf %231, %229 : vector<2x64xf32>
      %233 = arith.mulf %224, %arg31 : vector<2x64xf32>
      %234 = arith.addf %232, %233 : vector<2x64xf32>
      %cst_104 = arith.constant 0.000000e+00 : f32
      %235 = vector.broadcast %cst_104 : f32 to vector<2x64xf32>
      %236 = arith.maximumf %234, %235 : vector<2x64xf32>
      scf.yield %236 : vector<2x64xf32>
    }
    %c0_82 = arith.constant 0 : index
    %c0_83 = arith.constant 0 : index
    %160 = vector.load %arg27[%c0_82, %c0_83] : memref<64x1xf32, #tpu.memory_space<vmem>>, vector<64x1xf32>
    %161 = arith.truncf %159 : vector<2x64xf32> to vector<2x64xbf16>
    %162 = arith.truncf %160 : vector<64x1xf32> to vector<64x1xbf16>
    %cst_84 = arith.constant dense<0.000000e+00> : vector<2x1xf32>
    %163 = tpu.matmul %161, %162, %cst_84 {dimension_numbers = #tpu.dot_dimension_numbers<[1], [0], [0], [1], [0, 0, 1, 1], [], []>} : vector<2x64xbf16>, vector<64x1xbf16>, vector<2x1xf32> -> vector<2x1xf32>
    %c0_85 = arith.constant 0 : index
    %c0_86 = arith.constant 0 : index
    %164 = vector.load %arg28[%c0_85, %c0_86] : memref<1x1xf32, #tpu.memory_space<vmem>>, vector<1x1xf32>
    %165 = vector.broadcast %164 : vector<1x1xf32> to vector<2x1xf32>
    %166 = arith.addf %163, %165 : vector<2x1xf32>
    %c0_87 = arith.constant 0 : index
    %c0_88 = arith.constant 0 : index
    %167 = vector.load %arg29[%c0_87, %c0_88] : memref<2x1xf32, #tpu.memory_space<vmem>>, vector<2x1xf32>
    tpu.vector_store %arg29[%c0_87, %c0_88], %166 {strides = array<i32>} : memref<2x1xf32, #tpu.memory_space<vmem>>, vector<2x1xf32>,
    return
  }
}

</mosaic_0001>

<bundles_post_ra>
// kernel: tpu_custom_call.1
= control target key start
LH: loop header
LB: loop body
LE: loop exit
PB: predicated region body
PF: predicated region fallthrough
CT: control target
= control target key end

     0   :  { %s2813_s6 = smov 1   ;;  %s2814_s10 = smov 2   ;;  %s3547_s0 = inlined_call_operand.smem [shape: u32[30], index: -1, kind: input, shape index: {}] }
   0x1   :  { %s2866_s5 = sld [smem:[%s3547_s0]]   ;;  %s2815_s14 = smov 3  }
   0x2   :  { %s2871_s9 = sld [smem:[%s3547_s0 + %s2813_s6]]   ;;  %s2816_s18 = smov 4  }
   0x3   :  { %s2876_s13 = sld [smem:[%s3547_s0 + %s2814_s10]]   ;;  %s2817_s22 = smov 5  }
   0x4   :  { %s2881_s17 = sld [smem:[%s3547_s0 + %s2815_s14]]   ;;  %s2818_s26 = smov 6  }
   0x5   :  { %s2886_s21 = sld [smem:[%s3547_s0 + %s2816_s18]]   ;;  %s2819_s30 = smov 7  }
   0x6   :  { %s2891_s25 = sld [smem:[%s3547_s0 + %s2817_s22]]   ;;  %s2820_s4 = smov 8  }
   0x7   :  { %s2896_s29 = sld [smem:[%s3547_s0 + %s2818_s26]]   ;;  %s2821_s10 = smov 9  }
   0x8   :  { %3568 = sst [smem:[#allocation17_spill]] %s2871_s9  ;;  %s2822_s15 = smov 10  }
   0x9   :  { %s2901_s3 = sld [smem:[%s3547_s0 + %s2819_s30]]   ;;  %s2823_s20 = smov 11  }
   0xa   :  { %3569 = sst [smem:[#allocation18_spill]] %s2881_s17  ;;  %s2824_s26 = smov 12  }
   0xb   :  { %3570 = sst [smem:[#allocation19_spill]] %s2886_s21  ;;  %s2825_s1 = smov 13  }
   0xc   :  { %3571 = sst [smem:[#allocation20_spill]] %s2891_s25  ;;  %s2826_s7 = smov 14  }
   0xd   :  { %s2906_s8 = sld [smem:[%s3547_s0 + %s2820_s4]]   ;;  %s2828_s22 = smov 16  }
   0xe   :  { %s2911_s14 = sld [smem:[%s3547_s0 + %s2821_s10]]   ;;  %s2829_s28 = smov 17  }
   0xf   :  { %s2916_s19 = sld [smem:[%s3547_s0 + %s2822_s15]]   ;;  %s2827_s15 = smov 15  }
  0x10   :  { %s2921_s24 = sld [smem:[%s3547_s0 + %s2823_s20]]  }
  0x11   :  { %s2926_s30 = sld [smem:[%s3547_s0 + %s2824_s26]]  }
  0x12   :  { %s2931_s6 = sld [smem:[%s3547_s0 + %s2825_s1]]   ;;  %s2841_s1 = smov 29  }
  0x13   :  { %s2936_s12 = sld [smem:[%s3547_s0 + %s2826_s7]]   ;;  %s2830_s7 = smov 18  }
  0x14   :  { %3572 = sst [smem:[#allocation21_spill]] %s2911_s14 }
  0x15   :  { %s2941_s20 = sld [smem:[%s3547_s0 + %s2827_s15]]   ;;  %s2831_s15 = smov 19  }
  0x16   :  { %s2946_s27 = sld [smem:[%s3547_s0 + %s2828_s22]]   ;;  %s2832_s22 = smov 20  }
  0x17   :  { %3573 = sst [smem:[#allocation22_spill]] %s2926_s30 }
  0x18   :  { %3574 = sst [smem:[#allocation23_spill]] %s2931_s6 }
  0x19   :  { %s2951_s4 = sld [smem:[%s3547_s0 + %s2829_s28]]   ;;  %s2833_s28 = smov 21  }
  0x1a   :  { %s2956_s25 = sld [smem:[%s3547_s0 + %s2830_s7]]   ;;  %s2834_s7 = smov 22  }
  0x1b   :  { %3575 = sst [smem:[#allocation24_spill]] %s2941_s20 }
  0x1c   :  { %3576 = sst [smem:[#allocation25_spill]] %s2946_s27 }
  0x1d   :  { %s2961_s20 = sld [smem:[%s3547_s0 + %s2831_s15]]   ;;  %s2835_s15 = smov 23  }
  0x1e   :  { %s2966_s21 = sld [smem:[%s3547_s0 + %s2832_s22]]   ;;  %s2836_s22 = smov 24  }
  0x1f   :  { %3577 = sst [smem:[#allocation26_spill]] %s2951_s4 }
  0x20   :  { %3578 = sst [smem:[#allocation27_spill]] %s2956_s25 }
  0x21   :  { %s2971_s4 = sld [smem:[%s3547_s0 + %s2833_s28]]   ;;  %s2837_s28 = smov 25  }
  0x22   :  { %s2976_s25 = sld [smem:[%s3547_s0 + %s2834_s7]]   ;;  %s2838_s7 = smov 26  }
  0x23   :  { %3579 = sst [smem:[#allocation28_spill]] %s2961_s20 }
  0x24   :  { %s2981_s20 = sld [smem:[%s3547_s0 + %s2835_s15]]   ;;  %s2839_s15 = smov 27  }
  0x25   :  { %s2986_s27 = sld [smem:[%s3547_s0 + %s2836_s22]]   ;;  %s2840_s22 = smov 28  }
  0x26   :  { %s2991_s30 = sld [smem:[%s3547_s0 + %s2837_s28]]  }
  0x27   :  { %s2996_s6 = sld [smem:[%s3547_s0 + %s2838_s7]]  }
  0x28   :  { %s3001_s9 = sld [smem:[%s3547_s0 + %s2839_s15]]  }
  0x29   :  { %s2221_s14 = sld [smem:[%s3547_s0 + %s2840_s22]]  }
  0x2a   :  { %s3009_s17 = sld [smem:[%s3547_s0 + %s2841_s1]]  }
  0x2f   :  { %v64_v0 = vstv %s2221_s14 }
  0x30   :  { %65 = vst [vmem:[#allocation2] sm:$0x1] %v64_v0 }
  0x31   :  { %66 = vsyncpa [#allocation4], 0 }
  0x32   :  { %67 = vsyncpa [#allocation6], 0 }
  0x33   :  { %68 = vsyncpa [#allocation9], 0 }
  0x34   :  { %69 = vsyncpa [#allocation12], 0  ;;  %s2842_s7 = smov [#allocation5]  }
  0x35   :  { %s98_s10 = sshll.u32 %s2842_s7, 4  ;;  %s99_s10 = int_to_ptr.vmem [resolvable:$true] %s98_s10 }
  0x36   :  { %s2677_s11 = scalar_lea.vmem %s99_s10, 16  ;;  %s2681_s15 = scalar_lea.vmem %s99_s10, 32 }
  0x37   :  { %p2678_p0 = scmp.ne.s32.totalorder %s99_s10, %s2677_s11  ;;  %p2682_p1 = scmp.lt.s32.totalorder %s99_s10, %s99_s10 }
  0x38   :  { %p2683_p2 = scmp.lt.s32.totalorder %s2681_s15, %s2677_s11 }
  0x3a   :  { %p2684_p3 = por %p2683_p2, %p2682_p1 }
  0x3c   :  { %p2685_p4 = pnand %p2684_p3, %p2678_p0 }
  0x3e   :  { %2688 = shalt.err (!%p2685_p4)
}
  0x3f   :  { %101 = dma.hbm_to_vmem [thread:$0]  %s2896_s29, 16, %s99_s10, [#allocation6]  }
  0x40   :  { %s2843_s0 = smov [#allocation8]   ;;  %s2844_s16 = smov [#allocation3]  }
  0x41   :  { %s121_s14 = sshll.u32 %s2843_s0, 4  ;;  %s75_s18 = sshll.u32 %s2844_s16, 4  ;;  %s122_s14 = int_to_ptr.vmem [resolvable:$true] %s121_s14  ;;  %s76_s18 = int_to_ptr.vmem [resolvable:$true] %s75_s18 }
  0x42   :  { %s2697_s22 = scalar_lea.vmem %s122_s14, 256  ;;  %p2702_p6 = scmp.lt.s32.totalorder %s122_s14, %s122_s14 }
  0x43   :  { %p2698_p5 = scmp.ne.s32.totalorder %s122_s14, %s2697_s22  ;;  %p2703_p7 = scmp.lt.s32.totalorder %s2697_s22, %s2697_s22 }
  0x45   :  { %p2704_p8 = por %p2703_p7, %p2702_p6 }
  0x47   :  { %p2705_p9 = pnand %p2704_p8, %p2698_p5 }
  0x49   :  { %2708 = shalt.err (!%p2705_p9)
}
  0x4a   :  { %s2845_s23 = smov 128   ;;  %s2846_s26 = smov 8  }
  0x4b   :  { %127 = dma.hbm_to_vmem [thread:$0]  %s2916_s19, 256, %s122_s14, [#allocation9], %s2845_s23, %s2845_s23, %s2846_s26  }
  0x4c   :  { %s2717_s29 = scalar_lea.vmem %s76_s18, 256  ;;  %p2722_p11 = scmp.lt.s32.totalorder %s76_s18, %s76_s18 }
  0x4d   :  { %p2718_p10 = scmp.ne.s32.totalorder %s76_s18, %s2717_s29  ;;  %p2723_p12 = scmp.lt.s32.totalorder %s2717_s29, %s2717_s29 }
  0x4f   :  { %p2724_p13 = por %p2723_p12, %p2722_p11 }
  0x51   :  { %p2725_p0 = pnand %p2724_p13, %p2718_p10 }
  0x53   :  { %2728 = shalt.err (!%p2725_p0)
}
  0x54   :  { %81 = dma.hbm_to_vmem [thread:$0]  %s2866_s5, 256, %s76_s18, [#allocation4], %s2845_s23, %s2845_s23, %s2846_s26  }
  0x55   :  { %s2847_s1 = smov [#allocation7]   ;;  %s2848_s2 = smov [#allocation10]  }
  0x56   :  { %s110_s28 = sshll.u32 %s2847_s1, 4  ;;  %s133_s7 = sshll.u32 %s2848_s2, 4  ;;  %s111_s28 = int_to_ptr.vmem [resolvable:$true] %s110_s28  ;;  %s134_s7 = int_to_ptr.vmem [resolvable:$true] %s133_s7 }
  0x57   :  { %s2737_s10 = scalar_lea.vmem %s111_s28, 16  ;;  %s2741_s19 = scalar_lea.vmem %s111_s28, 32 }
  0x58   :  { %p2738_p1 = scmp.ne.s32.totalorder %s111_s28, %s2737_s10  ;;  %p2742_p2 = scmp.lt.s32.totalorder %s111_s28, %s111_s28 }
  0x59   :  { %p2743_p3 = scmp.lt.s32.totalorder %s2741_s19, %s2737_s10 }
  0x5b   :  { %p2744_p4 = por %p2743_p3, %p2742_p2 }
  0x5d   :  { %p2745_p5 = pnand %p2744_p4, %p2738_p1 }
  0x5f   :  { %2748 = shalt.err (!%p2745_p5)
}
  0x60   :  { %113 = dma.hbm_to_vmem [thread:$0]  %s2906_s8, 16, %s111_s28, [#allocation6]  }
  0x61   :  { %s2757_s11 = scalar_lea.vmem %s134_s7, 1024  ;;  %p2762_p7 = scmp.lt.s32.totalorder %s134_s7, %s134_s7 }
  0x62   :  { %p2758_p6 = scmp.ne.s32.totalorder %s134_s7, %s2757_s11  ;;  %p2763_p8 = scmp.lt.s32.totalorder %s2757_s11, %s2757_s11 }
  0x64   :  { %p2764_p9 = por %p2763_p8, %p2762_p7 }
  0x66   :  { %p2765_p10 = pnand %p2764_p9, %p2758_p6 }
  0x68   :  { %2768 = shalt.err (!%p2765_p10)
}
  0x69   :  { %139 = dma.hbm_to_vmem [thread:$0]  %s2921_s24, 1024, %s134_s7, [#allocation9], %s2845_s23, %s2845_s23, %s2846_s26  }
  0x6a   :  { %s2849_s5 = smov [#allocation11]  }
  0x6b   :  { %s150_s15 = sshll.u32 %s2849_s5, 4  ;;  %s151_s15 = int_to_ptr.vmem [resolvable:$true] %s150_s15 }
  0x6c   :  { %s2777_s0 = scalar_lea.vmem %s151_s15, 16  ;;  %s2781_s14 = scalar_lea.vmem %s151_s15, 32 }
  0x6d   :  { %p2778_p11 = scmp.ne.s32.totalorder %s151_s15, %s2777_s0  ;;  %p2782_p12 = scmp.lt.s32.totalorder %s151_s15, %s151_s15 }
  0x6e   :  { %p2783_p13 = scmp.lt.s32.totalorder %s2781_s14, %s2777_s0 }
  0x70   :  { %p2784_p0 = por %p2783_p13, %p2782_p12 }
  0x72   :  { %p2785_p1 = pnand %p2784_p0, %p2778_p11 }
  0x74   :  { %2788 = shalt.err (!%p2785_p1)
}
  0x75   :  { %153 = dma.hbm_to_vmem [thread:$0]  %s2936_s12, 16, %s151_s15, [#allocation12]  }
  0x76   :  { %2797 = dma.done.wait [#allocation4], 256  }
  0x77   :  { %2798 = vsyncadd [#allocation4], 4294967040 }
  0x78   :  { %2799 = dma.done.wait [#allocation6], 32  }
  0x79   :  { %2800 = vsyncadd [#allocation6], 4294967264 }
  0x7a   :  { %2801 = dma.done.wait [#allocation9], 1280  }
  0x7b   :  { %2802 = vsyncadd [#allocation9], 4294966016 }
  0x7c   :  { %2803 = dma.done.wait [#allocation12], 16  }
  0x7d   :  { %2804 = vsyncadd [#allocation12], 4294967280  ;;  %v3562_v1 = vmov 0.0   ;;  %vm2851_vm0 = vmmov 0   ;;  %v3557_v2 = vmov 0   ;;  %v3032_v3 = vld [vmem:[%s2966_s21] sm:$0xff] }
  0x7e   :  { %2375 = vmatprep.subr.bf16.mxu0 %v3562_v1  ;;  %2387 = vmatprep.mubr.msk.bf16.mxu0 %vm2851_vm0, %v3562_v1  ;;  %3580 = vst [vmem:[#allocation29_spill] sm:$0xff] %v3032_v3  ;;  %v3035_v4 = vld [vmem:[%s2966_s21 + $0x8] sm:$0xff]  ;;  %v3038_v5 = vld [vmem:[%s2966_s21 + $0x10] sm:$0xff]  ;;  %v3041_v6 = vld [vmem:[%s2966_s21 + $0x18] sm:$0xff]  ;;  %vm331_vm1 = vcmask 1045504   ;;  %vm327_vm2 = vcmask 752640  }
  0x7f   :  { %2623 = vset.pattern.permute.xlu0 %v3557_v2  ;;  %2624 = vset.pattern.permute.xlu1 %v3557_v2  ;;  %v3044_v7 = vld [vmem:[%s2966_s21 + $0x20] sm:$0xff]  ;;  %v3047_v8 = vld [vmem:[%s2966_s21 + $0x28] sm:$0xff]  ;;  %v3052_v10 = vld [vmem:[%s2966_s21 + $0x30] sm:$0xff]  ;;  %vm382_vm3 = vcmask 130048   ;;  %vm603_vm11 = vcmask 1044480   ;;  %vm596_vm15 = vcmask 80896  }
  0x80   :  { %v3055_v11 = vld [vmem:[%s2966_s21 + $0x38] sm:$0xff]  ;;  %v3062_v14 = vld [vmem:[%s2971_s4] sm:$0xff]  ;;  %v3067_v16 = vld [vmem:[%s2971_s4 + $0x8] sm:$0xff]  ;;  %s3598_s21 = sld [smem:[#allocation18_spill]]  ;;  %s3410_s18 = smov 0  }
  0x81   :  { %v3070_v17 = vld [vmem:[%s2971_s4 + $0x10] sm:$0xff]  ;;  %v3073_v18 = vld [vmem:[%s2971_s4 + $0x18] sm:$0xff]  ;;  %v3076_v19 = vld [vmem:[%s2971_s4 + $0x20] sm:$0xff]  ;;  %s3602_s8 = sld [smem:[#allocation22_spill]] }
  0x82   :  { %v3079_v20 = vld [vmem:[%s2971_s4 + $0x28] sm:$0xff]  ;;  %v3082_v21 = vld [vmem:[%s2971_s4 + $0x30] sm:$0xff]  ;;  %v3085_v22 = vld [vmem:[%s2971_s4 + $0x38] sm:$0xff]  ;;  %s3603_s24 = sld [smem:[#allocation25_spill]]  ;;  %s2853_s4 = smov 64  }
  0x83   :  { %v3088_v23 = vld [vmem:[%s2976_s25] ss:$0 sm:$0xff]  ;;  %v3094_v25 = vld [vmem:[%s2981_s20 + $0x8] sm:$0xff]  ;;  %v3097_v26 = vld [vmem:[%s2981_s20 + $0x10] sm:$0xff]  ;;  %s3600_s25 = sld [smem:[#allocation17_spill]] }
  0x84   :  { %3581 = vst [vmem:[#allocation30_spill] sm:$0xff] %v3088_v23  ;;  %v3091_v24 = vld [vmem:[%s2981_s20] sm:$0xff]  ;;  %3583 = vst [vmem:[#allocation32_spill] sm:$0xff] %v3094_v25  ;;  %v3100_v27 = vld [vmem:[%s2981_s20 + $0x18] sm:$0xff]  ;;  %s3609_s12 = sld [smem:[#allocation27_spill]] }
  0x85   :  { %3582 = vst [vmem:[#allocation31_spill] sm:$0xff] %v3091_v24  ;;  %3584 = vst [vmem:[#allocation33_spill] sm:$0xff] %v3097_v26  ;;  %v3103_v28 = vld [vmem:[%s2981_s20 + $0x20] sm:$0xff]  ;;  %v3106_v29 = vld [vmem:[%s2981_s20 + $0x28] sm:$0xff]  ;;  %s3612_s16 = sld [smem:[#allocation20_spill]] }
  0x86   :  { %3585 = vst [vmem:[#allocation34_spill] sm:$0xff] %v3100_v27  ;;  %3586 = vst [vmem:[#allocation35_spill] sm:$0xff] %v3103_v28  ;;  %v3109_v30 = vld [vmem:[%s2981_s20 + $0x30] sm:$0xff]  ;;  %v3112_v31 = vld [vmem:[%s2981_s20 + $0x38] sm:$0xff] }
  0x87   :  { %3587 = vst [vmem:[#allocation36_spill] sm:$0xff] %v3106_v29  ;;  %3588 = vst [vmem:[#allocation37_spill] sm:$0xff] %v3109_v30  ;;  %v3115_v32 = vld [vmem:[%s2981_s20 + $0x40] sm:$0xff]  ;;  %v3118_v33 = vld [vmem:[%s2981_s20 + $0x48] sm:$0xff] }
  0x88   :  { %3589 = vst [vmem:[#allocation38_spill] sm:$0xff] %v3112_v31  ;;  %3590 = vst [vmem:[#allocation39_spill] sm:$0xff] %v3115_v32  ;;  %v3121_v34 = vld [vmem:[%s2981_s20 + $0x50] sm:$0xff]  ;;  %v3124_v35 = vld [vmem:[%s2981_s20 + $0x58] sm:$0xff] }
  0x89   :  { %3591 = vst [vmem:[#allocation40_spill] sm:$0xff] %v3121_v34  ;;  %v3127_v36 = vld [vmem:[%s2981_s20 + $0x60] sm:$0xff]  ;;  %v3130_v37 = vld [vmem:[%s2981_s20 + $0x68] sm:$0xff]  ;;  %v3133_v38 = vld [vmem:[%s2981_s20 + $0x70] sm:$0xff] }
  0x8a   :  { %v3136_v39 = vld [vmem:[%s2981_s20 + $0x78] sm:$0xff]  ;;  %v3139_v40 = vld [vmem:[%s2986_s27] sm:$0xff]  ;;  %v3142_v41 = vld [vmem:[%s2986_s27 + $0x8] sm:$0xff]  ;;  %s3610_s20 = sld [smem:[#allocation26_spill]] }
  0x8b   :  { %3592 = vst [vmem:[#allocation41_spill] sm:$0xff] %v3139_v40  ;;  %3593 = vst [vmem:[#allocation42_spill] sm:$0xff] %v3142_v41  ;;  %v3145_v42 = vld [vmem:[%s2986_s27 + $0x10] sm:$0xff]  ;;  %v3148_v43 = vld [vmem:[%s2986_s27 + $0x18] sm:$0xff] }
  0x8c   :  { %3594 = vst [vmem:[#allocation43_spill] sm:$0xff] %v3145_v42  ;;  %3595 = vst [vmem:[#allocation44_spill] sm:$0xff] %v3148_v43  ;;  %v3151_v44 = vld [vmem:[%s2986_s27 + $0x20] sm:$0xff]  ;;  %v3154_v45 = vld [vmem:[%s2986_s27 + $0x28] sm:$0xff] }
  0x8d   :  { %v3157_v46 = vld [vmem:[%s2986_s27 + $0x30] sm:$0xff]  ;;  %v3160_v47 = vld [vmem:[%s2986_s27 + $0x38] sm:$0xff]  ;;  %v3163_v48 = vld [vmem:[%s2986_s27 + $0x40] sm:$0xff] }
  0x8e   :  { %v3166_v49 = vld [vmem:[%s2986_s27 + $0x48] sm:$0xff]  ;;  %v3169_v50 = vld [vmem:[%s2986_s27 + $0x50] sm:$0xff]  ;;  %v3172_v51 = vld [vmem:[%s2986_s27 + $0x58] sm:$0xff] }
  0x8f   :  { %v3175_v52 = vld [vmem:[%s2986_s27 + $0x60] sm:$0xff]  ;;  %v3178_v53 = vld [vmem:[%s2986_s27 + $0x68] sm:$0xff]  ;;  %v3181_v54 = vld [vmem:[%s2986_s27 + $0x70] sm:$0xff] }
  0x90   :  { %v3184_v55 = vld [vmem:[%s2986_s27 + $0x78] sm:$0xff]  ;;  %v3187_v56 = vld [vmem:[%s2991_s30] sm:$0x3]  ;;  %v311_v58 = vld [vmem:[%s2901_s3 + $0x50] sm:$0xff]  ;;  %s3606_s30 = sld [smem:[#allocation19_spill]] }
  0x91   :  { %3596 = vst [vmem:[#allocation45_spill] sm:$0xff] %v3187_v56  ;;  %v3190_v57 = vld [vmem:[%s2996_s6] sm:$0x3]  ;;  %v312_v59 = vld [vmem:[%s2901_s3 + $0x58] sm:$0xf]  ;;  %v310_v62 = vld [vmem:[%s2901_s3 + $0x48] sm:$0xff] }
  0x92   :  { %3597 = vst [vmem:[#allocation46_spill] sm:$0xff] %v3190_v57  ;;  %v319_v60 = vpack.c.bf16 %v312_v59, %v311_v58  ;;  %v309_v61 = vld [vmem:[%s2901_s3 + $0x40] sm:$0xff]  ;;  %v307_v12 = vld [vmem:[%s2901_s3 + $0x30] sm:$0xff]  ;;  %v308_v13 = vld [vmem:[%s2901_s3 + $0x38] sm:$0xff]  ;;  %s3608_s6 = sld [smem:[#allocation24_spill]] }
  0x93   :  { %v318_v0 = vpack.c.bf16 %v310_v62, %v309_v61  ;;  %v203_v9 = vld [vmem:[%s2876_s13] sm:$0xff]  ;;  %v205_v15 = vld [vmem:[%s2876_s13 + $0x10] sm:$0xff]  ;;  %v204_v58 = vld [vmem:[%s2876_s13 + $0x8] sm:$0xff]  ;;  %s3611_s27 = sld [smem:[#allocation28_spill]] }
  0x94   :  { %v333_v63 = vsel %vm331_vm1, %v319_v60, 0  ;;  %208 = vperm.xlu0 %2623, %v203_v9   ;;  %214 = vperm.xlu1 %2624, %v205_v15   ;;  %v206_v59 = vld [vmem:[%s2876_s13 + $0x18] sm:$0xff]  ;;  %v317_v60 = vpack.c.bf16 %v308_v13, %v307_v12  ;;  %v305_v61 = vld [vmem:[%s2901_s3 + $0x20] sm:$0xff]  ;;  %v306_v62 = vld [vmem:[%s2901_s3 + $0x28] sm:$0xff]  ;;  %s3599_s13 = sld [smem:[#allocation21_spill]]  ;;  %vm656_vm1 = vcmask 523264  }
  0x95   :  { %2376 = vmatpush3.bf16.msra.mxu0 %v333_v63  ;;  %v231_v63 = vld [vmem:[%s3598_s21] sm:$0xff]  ;;  %v232_v9 = vld [vmem:[%s3598_s21 + $0x8] sm:$0xff]  ;;  %v316_v2 = vpack.c.bf16 %v306_v62, %v305_v61  ;;  %v303_v15 = vld [vmem:[%s2901_s3 + $0x10] sm:$0xff] }
  0x96   :  { %2377 = vmatprep.subr.bf16.mxu0 %v3562_v1  ;;  %v304_v56 = vld [vmem:[%s2901_s3 + $0x18] sm:$0xff]  ;;  %v233_v12 = vld [vmem:[%s3598_s21 + $0x10] sm:$0xff]  ;;  %v302_v57 = vld [vmem:[%s2901_s3 + $0x8] sm:$0xff] }
  0x97   :  { %v234_v13 = vld [vmem:[%s3598_s21 + $0x18] sm:$0xff]  ;;  %v296_v61 = vld [vmem:[#allocation3 + $0x8] sm:$0xff] }
  0x98   :  { %211 = vperm.xlu0 %2623, %v204_v58   ;;  %217 = vperm.xlu1 %2624, %v206_v59   ;;  %v301_v58 = vld [vmem:[%s2901_s3] sm:$0xff]  ;;  %s3601_s3 = sld [smem:[#allocation23_spill]]  ;;  %v905_v27 = vld [vmem:[#allocation10 + $0x28] sm:$0xff] }
  0x99   :  { %2378 = vmatpush3.bf16.msra.mxu0 %v318_v0  ;;  %v315_v0 = vpack.c.bf16 %v304_v56, %v303_v15  ;;  %v314_v59 = vpack.c.bf16 %v302_v57, %v301_v58  ;;  %v2238_v57 = vld [vmem:[#allocation7] ss:$0 sm:$0xff]  ;;  %v903_v25 = vld [vmem:[#allocation10 + $0x18] sm:$0xff] }
  0x9a   :  { %2379 = vmatprep.subr.bf16.mxu0 %v3562_v1 }
  0x9c   :  { %236 = vperm.xlu0 %2623, %v231_v63   ;;  %239 = vperm.xlu1 %2624, %v232_v9   ;;  %v3561_v63 = vlaneseq }
  0x9d   :  { %2380 = vmatpush3.bf16.msra.mxu0 %v317_v60  ;;  %v295_v60 = vld [vmem:[#allocation3] sm:$0xff] }
  0x9e   :  { %2381 = vmatprep.subr.bf16.mxu0 %v3562_v1  ;;  %v313_v62 = vpack.c.bf16 %v296_v61, %v295_v60 }
  0xa0   :  { %242 = vperm.xlu0 %2623, %v233_v12   ;;  %245 = vperm.xlu1 %2624, %v234_v13  }
  0xa1   :  { %2382 = vmatpush3.bf16.msra.mxu0 %v316_v2  ;;  %v3218_v2 = vand.u32 127, %v3561_v63 }
  0xa2   :  { %2383 = vmatprep.subr.bf16.mxu0 %v3562_v1 }
  0xa5   :  { %2384 = vmatpush3.bf16.msra.mxu0 %v315_v0 }
  0xa6   :  { %2385 = vmatprep.subr.bf16.mxu0 %v3562_v1 }
  0xa9   :  { %2386 = vmatpush3.bf16.msra.mxu0 %v314_v59 }
  0xac   :  { %2388 = vmatmul.mubr.msk.bf16.vlgmr.msra.gmra.mxu0 %vm327_vm2, %v313_v62 }
 0x10f   :  { %v209_v56 = vpop.permute.xlu0 %208  ;;  %v215_v12 = vpop.permute.xlu1 %214 }
 0x110   :  { %vm219_vm4 = vcmp.eq.s32.totalorder %v209_v56, %v3218_v2  ;;  %vm221_vm7 = vcmp.eq.s32.totalorder %v215_v12, %v3218_v2 }
 0x111   :  { %v2223_v9 = vsel %vm219_vm4, 1.0, %v3562_v1 }
 0x112   :  { %2395 = vmatprep.mubr.msk.f32.mxu1 %vm382_vm3, %v2223_v9 }
 0x113   :  { %v212_v58 = vpop.permute.xlu0 %211  ;;  %v218_v63 = vpop.permute.xlu1 %217 }
 0x114   :  { %vm220_vm8 = vcmp.eq.s32.totalorder %v212_v58, %v3218_v2  ;;  %vm222_vm9 = vcmp.eq.s32.totalorder %v218_v63, %v3218_v2  ;;  %v583_v63 = vld [vmem:[%s3599_s13 + $0x30] sm:$0xff] }
 0x115   :  { %v2224_v12 = vsel %vm220_vm8, 1.0, %v3562_v1 }
 0x117   :  { %v237_v9 = vpop.permute.xlu0 %236 }
 0x118   :  { %vm247_vm10 = vcmp.eq.s32.totalorder %v237_v9, %v3218_v2 }
 0x11b   :  { %v243_v58 = vpop.permute.xlu0 %242 }
 0x11c   :  { %vm249_vm13 = vcmp.eq.s32.totalorder %v243_v58, %v3218_v2 }
 0x16c   :  { %v369_v15 = vpop.f32.mrf.mxu0 }
 0x16d   :  { %v370_v0 = vadd.f32 %v2238_v57, %v369_v15  ;;  %v592_v15 = vld [vmem:[#allocation8 + $0x8] sm:$0x3] }
 0x16e   :  { %v2389_v13 = vpop.f32.mrf.mxu0 }
 0x16f   :  { %v378_v62 = vmul.f32 0.01, %v370_v0  ;;  %vm376_vm6 = vcmp.ge.f32.partialorder %v370_v0, 0.0 }
 0x170   :  { %v372_v59 = vpop.f32.mrf.mxu0 }
 0x171   :  { %v373_v60 = vadd.f32 %v2238_v57, %v372_v59  ;;  %v3228_v13 = vsel %vm376_vm6, %v370_v0, %v378_v62  ;;  %v591_v57 = vld [vmem:[#allocation8] sm:$0xff]  ;;  %v2225_v59 = vsel %vm221_vm7, 1.0, %v3562_v1  ;;  %v2227_v62 = vsel %vm247_vm10, 1.0, %v3562_v1 }
 0x172   :  { %v2390_v61 = vpop.f32.mrf.mxu0  ;;  %v595_v0 = vpack.c.bf16 %v592_v15, %v591_v57  ;;  %v297_v15 = vld [vmem:[%s3600_s25] sm:$0xff]  ;;  %vm874_vm10 = vcmask 7168  }
 0x173   :  { %vm377_vm5 = vcmp.ge.f32.partialorder %v373_v60, 0.0  ;;  %v379_v23 = vmul.f32 0.01, %v373_v60  ;;  %v584_v61 = vld [vmem:[%s3599_s13 + $0x38] sm:$0xff] }
 0x174   :  { %v605_v57 = vsel %vm603_vm11, %v595_v0, 0 }
 0x175   :  { %v3224_v56 = vsel %vm377_vm5, %v373_v60, %v379_v23  ;;  %v240_v23 = vpop.permute.xlu1 %239  ;;  %v2226_v60 = vsel %vm222_vm9, 1.0, %v3562_v1 }
 0x176   :  { %2391 = vmatprep.subr.mxu1 %v3224_v56  ;;  %vm248_vm12 = vcmp.eq.s32.totalorder %v240_v23, %v3218_v2  ;;  %v2229_v23 = vsel %vm249_vm13, 1.0, %v3562_v1  ;;  %vm985_vm13 = vcmask 261120  }
 0x177   :  { %2392 = vmatpush3.msra.mxu1 %v3224_v56  ;;  %v2228_v26 = vsel %vm248_vm12, 1.0, %v3562_v1 }
 0x178   :  { %2393 = vmatprep.subr.mxu1 %v3228_v13 }
 0x179   :  { %2394 = vmatpush3.msra.mxu1 %v3228_v13  ;;  %v246_v9 = vpop.permute.xlu1 %245 }
 0x17a   :  { %2396 = vmatmul.mubr.msk.f32.vlgmr.msra.gmra.mxu1 %vm382_vm3, %v2224_v12  ;;  %2401 = vmatprep.subr.mxu1 %v3224_v56  ;;  %v590_v12 = vpack.c.bf16 %v584_v61, %v583_v63  ;;  %vm250_vm14 = vcmp.eq.s32.totalorder %v246_v9, %v3218_v2  ;;  %v581_v61 = vld [vmem:[%s3599_s13 + $0x20] sm:$0xff] }
 0x17b   :  { %2398 = vmatprep.mubr.msk.f32.mxu1 %vm382_vm3, %v2225_v59  ;;  %2402 = vmatpush3.msra.mxu1 %v3224_v56  ;;  %v298_v59 = vld [vmem:[%s3600_s25 + $0x8] sm:$0xff]  ;;  %v2230_v63 = vsel %vm250_vm14, 1.0, %v3562_v1  ;;  %v580_v1 = vld [vmem:[%s3599_s13 + $0x18] sm:$0xff] }
 0x17c   :  { %2403 = vmatprep.subr.mxu1 %v3228_v13  ;;  %v593_v58 = vpack.c.bf16 %v298_v59, %v297_v15  ;;  %v745_v15 = vld [vmem:[%s3601_s3 + $0x38] sm:$0xff] }
 0x17d   :  { %2404 = vmatpush3.msra.mxu1 %v3228_v13 }
 0x17e   :  { %2399 = vmatmul.mubr.msk.f32.gmra.mxu1 %vm382_vm3, %v2226_v60  ;;  %2561 = vmatprep.subr.msk.bf16.mxu1 %vm603_vm11, %v595_v0  ;;  %v299_v60 = vld [vmem:[%s3600_s25 + $0x10] sm:$0xff]  ;;  %v300_v0 = vld [vmem:[%s3600_s25 + $0x18] sm:$0xff] }
 0x17f   :  { %2405 = vmatprep.mubr.msk.f32.mxu1 %vm382_vm3, %v2227_v62  ;;  %v582_v62 = vld [vmem:[%s3599_s13 + $0x28] sm:$0xff]  ;;  %v594_v9 = vpack.c.bf16 %v300_v0, %v299_v60  ;;  %v577_v0 = vld [vmem:[%s3599_s13] sm:$0xff] }
 0x180   :  { %v743_v60 = vld [vmem:[%s3601_s3 + $0x28] sm:$0xff] }
 0x182   :  { %2406 = vmatmul.mubr.msk.f32.vlgmr.msra.gmra.mxu1 %vm382_vm3, %v2228_v26  ;;  %v589_v26 = vpack.c.bf16 %v582_v62, %v581_v61  ;;  %v740_v62 = vld [vmem:[%s3601_s3 + $0x10] sm:$0xff] }
 0x183   :  { %2408 = vmatprep.mubr.msk.f32.mxu1 %vm382_vm3, %v2229_v23  ;;  %2412 = vmatpush3.bf16.msra.mxu1 %v605_v57  ;;  %v744_v57 = vld [vmem:[%s3601_s3 + $0x30] sm:$0xff] }
 0x184   :  { %2417 = vmatprep.subr.bf16.mxu1 %v590_v12  ;;  %v751_v59 = vpack.c.bf16 %v745_v15, %v744_v57  ;;  %v579_v23 = vld [vmem:[%s3599_s13 + $0x10] sm:$0xff]  ;;  %v739_v57 = vld [vmem:[%s3601_s3 + $0x8] sm:$0xff] }
 0x185   :  { %v588_v24 = vpack.c.bf16 %v580_v1, %v579_v23 }
 0x186   :  { %2409 = vmatmul.mubr.msk.f32.gmra.mxu1 %vm382_vm3, %v2230_v63  ;;  %2429 = vmatprep.subr.bf16.mxu0 %v751_v59  ;;  %v578_v63 = vld [vmem:[%s3599_s13 + $0x8] sm:$0xff] }
 0x187   :  { %2413 = vmatprep.mubr.msk.bf16.mxu1 %vm596_vm15, %v593_v58  ;;  %2430 = vmatpush3.bf16.msra.mxu0 %v751_v59  ;;  %v742_v58 = vld [vmem:[%s3601_s3 + $0x20] sm:$0xff]  ;;  %v587_v61 = vpack.c.bf16 %v578_v63, %v577_v0 }
 0x188   :  { %v907_v59 = vld [vmem:[#allocation10 + $0x38] sm:$0xff] }
 0x18a   :  { %2414 = vmatmul.mubr.msk.bf16.vlgmr.msra.gmra.mxu1 %vm596_vm15, %v594_v9  ;;  %v741_v9 = vld [vmem:[%s3601_s3 + $0x18] sm:$0xff] }
 0x18b   :  { %2418 = vmatpush3.bf16.msra.mxu1 %v590_v12  ;;  %v750_v12 = vpack.c.bf16 %v743_v60, %v742_v58  ;;  %v749_v1 = vpack.c.bf16 %v741_v9, %v740_v62  ;;  %v730_v58 = vld [vmem:[%s3602_s8 + $0x30] sm:$0xff]  ;;  %v731_v60 = vld [vmem:[%s3602_s8 + $0x38] sm:$0xff] }
 0x18c   :  { %2419 = vmatprep.subr.bf16.mxu1 %v589_v26 }
 0x18d   :  { %2431 = vmatprep.subr.bf16.mxu0 %v750_v12 }
 0x18e   :  { %2432 = vmatpush3.bf16.msra.mxu0 %v750_v12  ;;  %v737_v12 = vpack.c.bf16 %v731_v60, %v730_v58 }
 0x18f   :  { %2420 = vmatpush3.bf16.msra.mxu1 %v589_v26  ;;  %2433 = vmatprep.subr.bf16.mxu0 %v749_v1  ;;  %v738_v26 = vld [vmem:[%s3601_s3] sm:$0xff] }
 0x190   :  { %2421 = vmatprep.subr.bf16.mxu1 %v588_v24  ;;  %v748_v15 = vpack.c.bf16 %v739_v57, %v738_v26 }
 0x192   :  { %2434 = vmatpush3.bf16.msra.mxu0 %v749_v1 }
 0x193   :  { %2422 = vmatpush3.bf16.msra.mxu1 %v588_v24  ;;  %2435 = vmatprep.subr.bf16.mxu0 %v748_v15  ;;  %v906_v24 = vld [vmem:[#allocation10 + $0x30] sm:$0xff] }
 0x194   :  { %2423 = vmatprep.subr.bf16.mxu1 %v587_v61  ;;  %v911_v23 = vpack.c.bf16 %v907_v59, %v906_v24  ;;  %v904_v59 = vld [vmem:[#allocation10 + $0x20] sm:$0xff] }
 0x196   :  { %2436 = vmatpush3.bf16.msra.mxu0 %v748_v15 }
 0x197   :  { %2424 = vmatpush3.bf16.msra.mxu1 %v587_v61  ;;  %2453 = vmatprep.subr.bf16.mxu0 %v911_v23 }
 0x198   :  { %2441 = vmatprep.subr.bf16.mxu1 %v737_v12 }
 0x23a   :  { %v2397_v0 = vpop.f32.mrf.mxu1 }
 0x23c   :  { %v461_v63 = vpop.f32.mrf.mxu1 }
 0x23d   :  { %v585_v61 = vpack.c.bf16 %v2397_v0, %v461_v63  ;;  %v910_v0 = vpack.c.bf16 %v905_v27, %v904_v59  ;;  %v902_v63 = vld [vmem:[#allocation10 + $0x10] sm:$0xff] }
 0x23e   :  { %v2400_v62 = vpop.f32.mrf.mxu1  ;;  %v1202_v59 = vld [vmem:[%s3603_s24 + $0x58] sm:$0xff] }
 0x23f   :  { %2425 = vmatprep.mubr.msk.bf16.mxu1 %vm656_vm1, %v585_v61 }
 0x240   :  { %v471_v9 = vpop.f32.mrf.mxu1 }
 0x241   :  { %v586_v1 = vpack.c.bf16 %v2400_v62, %v471_v9  ;;  %v900_v62 = vld [vmem:[#allocation10] sm:$0xff]  ;;  %v901_v9 = vld [vmem:[#allocation10 + $0x8] sm:$0xff] }
 0x242   :  { %v2407_v26 = vpop.f32.mrf.mxu1  ;;  %v908_v27 = vpack.c.bf16 %v901_v9, %v900_v62  ;;  %v1198_v62 = vld [vmem:[%s3603_s24 + $0x38] sm:$0xff]  ;;  %v3604_v9 = vmov 0  }
 0x243   :  { %2426 = vmatmul.mubr.msk.bf16.vlgmr.msra.gmra.mxu1 %vm656_vm1, %v586_v1 }
 0x244   :  { %v558_v57 = vpop.f32.mrf.mxu1  ;;  %2442 = vmatpush3.bf16.msra.mxu1 %v737_v12  ;;  %v909_v12 = vpack.c.bf16 %v903_v25, %v902_v63  ;;  %v1196_v63 = vld [vmem:[%s3603_s24 + $0x28] sm:$0xff] }
 0x245   :  { %v746_v15 = vpack.c.bf16 %v2407_v26, %v558_v57  ;;  %v1204_v26 = vld [vmem:[%s3603_s24 + $0x68] sm:$0xff]  ;;  %v1206_v57 = vld [vmem:[%s3603_s24 + $0x78] sm:$0xff] }
 0x246   :  { %v2410_v24 = vpop.f32.mrf.mxu1 }
 0x247   :  { %2437 = vmatprep.mubr.msk.bf16.mxu0 %vm656_vm1, %v746_v15  ;;  %v1203_v15 = vld [vmem:[%s3603_s24 + $0x60] sm:$0xff] }
 0x248   :  { %v568_v58 = vpop.f32.mrf.mxu1 }
 0x249   :  { %v747_v60 = vpack.c.bf16 %v2410_v24, %v568_v58  ;;  %v1205_v24 = vld [vmem:[%s3603_s24 + $0x70] sm:$0xff] }
 0x24a   :  { %v1282_v25 = vpack.c.bf16 %v1205_v24, %v1203_v15  ;;  %v1192_v15 = vld [vmem:[%s3603_s24 + $0x8] sm:$0xff] }
 0x24b   :  { %2438 = vmatmul.mubr.msk.bf16.vlgmr.msra.gmra.mxu0 %vm656_vm1, %v747_v60  ;;  %v1199_v60 = vld [vmem:[%s3603_s24 + $0x40] sm:$0xff] }
 0x24c   :  { %2454 = vmatpush3.bf16.msra.mxu0 %v911_v23  ;;  %2461 = vmatprep.mubr.msk.bf16.mxu0 %vm656_vm1, %v585_v61  ;;  %v1283_v23 = vpack.c.bf16 %v1206_v57, %v1204_v26  ;;  %v1200_v61 = vld [vmem:[%s3603_s24 + $0x48] sm:$0xff]  ;;  %v1279_v26 = vpack.c.bf16 %v1198_v62, %v1196_v63  ;;  %v1197_v57 = vld [vmem:[%s3603_s24 + $0x30] sm:$0xff] }
 0x24d   :  { %2455 = vmatprep.subr.bf16.mxu0 %v910_v0  ;;  %v1281_v58 = vpack.c.bf16 %v1202_v59, %v1200_v61  ;;  %v1191_v59 = vld [vmem:[%s3603_s24] sm:$0xff]  ;;  %v729_v63 = vld [vmem:[%s3602_s8 + $0x28] sm:$0xff] }
 0x250   :  { %2456 = vmatpush3.bf16.msra.mxu0 %v910_v0  ;;  %v1201_v0 = vld [vmem:[%s3603_s24 + $0x50] sm:$0xff] }
 0x251   :  { %2457 = vmatprep.subr.bf16.mxu0 %v909_v12 }
 0x254   :  { %2458 = vmatpush3.bf16.msra.mxu0 %v909_v12  ;;  %v1280_v12 = vpack.c.bf16 %v1201_v0, %v1199_v60  ;;  %v3605_v60 = vmov 0.0   ;;  %v728_v0 = vld [vmem:[%s3602_s8 + $0x20] sm:$0xff] }
 0x255   :  { %2459 = vmatprep.subr.bf16.mxu0 %v908_v27  ;;  %v736_v62 = vpack.c.bf16 %v729_v63, %v728_v0 }
 0x257   :  { %2443 = vmatprep.subr.bf16.mxu1 %v736_v62 }
 0x258   :  { %2460 = vmatpush3.bf16.msra.mxu0 %v908_v27  ;;  %v1195_v27 = vld [vmem:[%s3603_s24 + $0x20] sm:$0xff]  ;;  %2444 = vmatpush3.bf16.msra.mxu1 %v736_v62 }
 0x259   :  { %1306 = vmatprep.subr.bf16.mxu0 %v1283_v23  ;;  %v1194_v23 = vld [vmem:[%s3603_s24 + $0x18] sm:$0xff]  ;;  %v1278_v24 = vpack.c.bf16 %v1197_v57, %v1195_v27  ;;  %v724_v57 = vld [vmem:[%s3602_s8] sm:$0xff] }
 0x25a   :  { %v1277_v61 = vpack.c.bf16 %v1194_v23, %v1192_v15  ;;  %v725_v15 = vld [vmem:[%s3602_s8 + $0x8] sm:$0xff] }
 0x25b   :  { %2462 = vmatmul.mubr.msk.bf16.vlgmr.msra.gmra.mxu0 %vm656_vm1, %v586_v1  ;;  %v1193_v1 = vld [vmem:[%s3603_s24 + $0x10] sm:$0xff]  ;;  %v734_v23 = vpack.c.bf16 %v725_v15, %v724_v57 }
 0x25c   :  { %1307 = vmatpush1.bf16.msra.mxu0 %v1282_v25  ;;  %1330 = vmatprep.mubr.bf16.mxu0 %v3604_v9  ;;  %v1276_v25 = vpack.c.bf16 %v1193_v1, %v1191_v59 }
 0x25d   :  { %1308 = vmatprep.subr.bf16.mxu0 %v1281_v58  ;;  %v1275_v58 = vpack.c.bf16 %v3224_v56, %v3228_v13 }
 0x260   :  { %1309 = vmatpush1.bf16.msra.mxu0 %v1280_v12  ;;  %v726_v12 = vld [vmem:[%s3602_s8 + $0x10] sm:$0xff] }
 0x261   :  { %1310 = vmatprep.subr.bf16.mxu0 %v1279_v26  ;;  %v727_v26 = vld [vmem:[%s3602_s8 + $0x18] sm:$0xff] }
 0x262   :  { %v735_v27 = vpack.c.bf16 %v727_v26, %v726_v12 }
 0x264   :  { %1311 = vmatpush1.bf16.msra.mxu0 %v1278_v24  ;;  %2445 = vmatprep.subr.bf16.mxu1 %v735_v27  ;;  %v2415_v24 = vpop.f32.mrf.mxu1 }
 0x265   :  { %1312 = vmatprep.subr.bf16.mxu0 %v1277_v61  ;;  %2446 = vmatpush3.bf16.msra.mxu1 %v735_v27 }
 0x266   :  { %2447 = vmatprep.subr.bf16.mxu1 %v734_v23  ;;  %v641_v61 = vpop.f32.mrf.mxu1 }
 0x268   :  { %1313 = vmatpush1.bf16.msra.mxu0 %v1276_v25  ;;  %v2416_v59 = vpop.f32.mrf.mxu1 }
 0x269   :  { %2494 = vmatprep.subr.bf16.mxu0 %v3605_v60  ;;  %2448 = vmatpush3.bf16.msra.mxu1 %v734_v23 }
 0x26a   :  { %v644_v1 = vpop.f32.mrf.mxu1 }
 0x26b   :  { %2266 = vmatmul.mubr.msk.bf16.vlgmr.msra.gmra.mxu0 %vm656_vm1, %v1275_v58 }
 0x26c   :  { %2502 = vmatprep.mubr.msk.bf16.mxu0 %vm2851_vm0, %v3605_v60 }
 0x303   :  { %v2427_v25 = vpop.f32.mrf.mxu1 }
 0x304   :  { %v706_v0 = vadd.f32 %v2427_v25, %v2415_v24 }
 0x305   :  { %v697_v58 = vpop.f32.mrf.mxu1 }
 0x306   :  { %v698_v30 = vadd.f32 %v697_v58, %v641_v61  ;;  %v718_v27 = vmul.f32 0.01, %v706_v0  ;;  %vm714_vm5 = vcmp.ge.f32.partialorder %v706_v0, 0.0 }
 0x307   :  { %v2428_v63 = vpop.f32.mrf.mxu1 }
 0x308   :  { %v709_v62 = vadd.f32 %v2428_v63, %v2416_v59  ;;  %v716_v31 = vmul.f32 0.01, %v698_v30  ;;  %vm712_vm4 = vcmp.ge.f32.partialorder %v698_v30, 0.0  ;;  %v722_v42 = vsel %vm714_vm5, %v706_v0, %v718_v27 }
 0x309   :  { %v700_v28 = vpop.f32.mrf.mxu1 }
 0x30a   :  { %vm715_vm2 = vcmp.ge.f32.partialorder %v709_v62, 0.0  ;;  %v719_v12 = vmul.f32 0.01, %v709_v62  ;;  %v701_v26 = vadd.f32 %v700_v28, %v644_v1  ;;  %v720_v23 = vsel %vm712_vm4, %v698_v30, %v716_v31 }
 0x30b   :  { %v2439_v24 = vpop.f32.mrf.mxu0 }
 0x30c   :  { %vm713_vm6 = vcmp.ge.f32.partialorder %v701_v26, 0.0  ;;  %v717_v57 = vmul.f32 0.01, %v701_v26  ;;  %v723_v15 = vsel %vm715_vm2, %v709_v62, %v719_v12 }
 0x30d   :  { %v733_v43 = vpack.c.bf16 %v723_v15, %v722_v42  ;;  %v792_v61 = vpop.f32.mrf.mxu0 }
 0x30e   :  { %v721_v29 = vsel %vm713_vm6, %v701_v26, %v717_v57 }
 0x30f   :  { %v732_v40 = vpack.c.bf16 %v721_v29, %v720_v23  ;;  %v2440_v28 = vpop.f32.mrf.mxu0 }
 0x311   :  { %2449 = vmatprep.mubr.msk.bf16.mxu1 %vm656_vm1, %v732_v40  ;;  %v795_v31 = vpop.f32.mrf.mxu0 }
 0x312   :  { %2450 = vmatmul.mubr.msk.bf16.vlgmr.msra.gmra.mxu1 %vm656_vm1, %v733_v43 }
 0x3d2   :  { %v2451_v59 = vpop.f32.mrf.mxu1 }
 0x3d3   :  { %v856_v25 = vadd.f32 %v2451_v59, %v2439_v24 }
 0x3d4   :  { %v847_v1 = vpop.f32.mrf.mxu1 }
 0x3d5   :  { %v848_v58 = vadd.f32 %v847_v1, %v792_v61  ;;  %v868_v63 = vmul.f32 0.01, %v856_v25  ;;  %vm864_vm7 = vcmp.ge.f32.partialorder %v856_v25, 0.0 }
 0x3d6   :  { %v2452_v41 = vpop.f32.mrf.mxu1 }
 0x3d7   :  { %v866_v62 = vmul.f32 0.01, %v848_v58  ;;  %v859_v30 = vadd.f32 %v2452_v41, %v2440_v28  ;;  %vm862_vm8 = vcmp.ge.f32.partialorder %v848_v58, 0.0  ;;  %v872_v0 = vsel %vm864_vm7, %v856_v25, %v868_v63 }
 0x3d8   :  { %v850_v29 = vpop.f32.mrf.mxu1  ;;  %v877_v15 = vsel %vm874_vm10, %v872_v0, -inf }
 0x3d9   :  { %vm865_vm9 = vcmp.ge.f32.partialorder %v859_v30, 0.0  ;;  %v869_v42 = vmul.f32 0.01, %v859_v30  ;;  %v851_v40 = vadd.f32 %v850_v29, %v795_v31  ;;  %v870_v43 = vsel %vm862_vm8, %v848_v58, %v866_v62 }
 0x3da   :  { %v875_v23 = vsel %vm874_vm10, %v870_v43, -inf }
 0x3db   :  { %v873_v12 = vsel %vm865_vm9, %v859_v30, %v869_v42  ;;  %vm863_vm11 = vcmp.ge.f32.partialorder %v851_v40, 0.0  ;;  %v867_v26 = vmul.f32 0.01, %v851_v40 }
 0x3dc   :  { %v878_v27 = vsel %vm874_vm10, %v873_v12, -inf }
 0x3dd   :  { %v871_v57 = vsel %vm863_vm11, %v851_v40, %v867_v26  ;;  %v880_v24 = vmax.f32 %v877_v15, %v878_v27 }
 0x3de   :  { %v876_v41 = vsel %vm874_vm10, %v871_v57, -inf }
 0x3df   :  { %v879_v61 = vmax.f32 %v875_v23, %v876_v41  ;;  %v3607_v23 = vlaneseq }
 0x3e1   :  { %v881_v59 = vmax.f32 %v879_v61, %v880_v24  ;;  %v3320_v41 = vshrl.u32 %v3607_v23, 7 }
 0x3e3   :  { %v882_v28 = vrot.slane %v881_v59, 4 }
 0x3e5   :  { %v883_v1 = vmax.f32 %v881_v59, %v882_v28 }
 0x3e7   :  { %v884_v25 = vrot.slane %v883_v1, 2 }
 0x3e9   :  { %v885_v63 = vmax.f32 %v883_v1, %v884_v25  ;;  %v262_v1 = vadd.s32 8, %v3320_v41 }
 0x3eb   :  { %v886_v58 = vrot.slane %v885_v63, 1 }
 0x3ed   :  { %v887_v62 = vmax.f32 %v885_v63, %v886_v58 }
 0x3ef   :  { %v890_v30 = vsub.f32 %v872_v0, %v887_v62  ;;  %v891_v31 = vsub.f32 %v873_v12, %v887_v62  ;;  %v888_v29 = vsub.f32 %v870_v43, %v887_v62  ;;  %v889_v40 = vsub.f32 %v871_v57, %v887_v62  ;;  %v2231_v12 = vld [vmem:[%s3606_s30] ss:$0 sm:$0xff] }
 0x3f0   :  { %vm267_vm12 = vcmp.eq.s32.totalorder %v2231_v12, %v3320_v41  ;;  %vm268_vm14 = vcmp.eq.s32.totalorder %v2231_v12, %v262_v1  ;;  %v1188_v12 = vld [vmem:[%s3608_s6 + $0x68] sm:$0xff] }
 0x3f1   :  { %v896_v42 = vmul.f32 1.442695, %v890_v30  ;;  %v898_v26 = vmul.f32 1.442695, %v891_v31  ;;  %v892_v34 = vmul.f32 1.442695, %v888_v29 }
 0x3f2   :  { %v894_v32 = vmul.f32 1.442695, %v889_v40  ;;  %v2232_v57 = vsel %vm267_vm12, 1.0, %v3605_v60  ;;  %v2233_v29 = vsel %vm268_vm14, 1.0, %v3605_v60  ;;  %v1180_v1 = vld [vmem:[%s3608_s6 + $0x28] sm:$0xff] }
 0x3f3   :  { %2625 = vpow2.f32 %v896_v42  ;;  %2473 = vmatprep.mubr.msk.f32.mxu1 %vm985_vm13, %v2232_v57 }
 0x3f4   :  { %2627 = vpow2.f32 %v898_v26 }
 0x3f5   :  { %2629 = vpow2.f32 %v892_v34 }
 0x3f6   :  { %2631 = vpow2.f32 %v894_v32  ;;  %v2463_v32 = vpop.f32.mrf.mxu0 }
 0x3f8   :  { %v946_v34 = vpop.f32.mrf.mxu0 }
 0x3fa   :  { %v2464_v24 = vpop.f32.mrf.mxu0 }
 0x3fc   :  { %v949_v25 = vpop.f32.mrf.mxu0 }
 0x400   :  { %v2626_v27 = vpop.eup %2625 }
 0x401   :  { %v2628_v15 = vpop.eup %2627  ;;  %973 = vperm.xlu1 %2624, %v2626_v27  }
 0x402   :  { %978 = vperm.xlu0 %2623, %v2628_v15   ;;  %v2630_v0 = vpop.eup %2629 }
 0x403   :  { %v2632_v43 = vpop.eup %2631 }
 0x405   :  { %963 = vperm.xlu1 %2624, %v2630_v0  }
 0x406   :  { %968 = vperm.xlu0 %2623, %v2632_v43  }
 0x47c   :  { %v974_v61 = vpop.permute.xlu1 %973 }
 0x47d   :  { %v979_v59 = vpop.permute.xlu0 %978  ;;  %v983_v63 = vmul.f32 %v2463_v32, %v974_v61  ;;  %v1189_v32 = vld [vmem:[%s3608_s6 + $0x70] sm:$0xff] }
 0x47e   :  { %v984_v28 = vmul.f32 %v2464_v24, %v979_v59  ;;  %v1183_v59 = vld [vmem:[%s3608_s6 + $0x40] sm:$0xff] }
 0x480   :  { %2465 = vmatprep.subr.mxu1 %v984_v28  ;;  %v964_v62 = vpop.permute.xlu1 %963 }
 0x481   :  { %2466 = vmatpush3.msra.mxu1 %v984_v28  ;;  %v969_v58 = vpop.permute.xlu0 %968  ;;  %v981_v31 = vmul.f32 %v964_v62, %v946_v34  ;;  %v1186_v34 = vld [vmem:[%s3608_s6 + $0x58] sm:$0xff]  ;;  %v1185_v28 = vld [vmem:[%s3608_s6 + $0x50] sm:$0xff]  ;;  %v1179_v62 = vld [vmem:[%s3608_s6 + $0x20] sm:$0xff] }
 0x482   :  { %v982_v30 = vmul.f32 %v969_v58, %v949_v25  ;;  %2467 = vmatprep.subr.mxu1 %v983_v63  ;;  %v1182_v25 = vld [vmem:[%s3608_s6 + $0x38] sm:$0xff] }
 0x483   :  { %2468 = vmatpush3.msra.mxu1 %v983_v63  ;;  %v1214_v63 = vpack.c.bf16 %v1185_v28, %v1183_v59  ;;  %v1213_v58 = vpack.c.bf16 %v1182_v25, %v1180_v1 }
 0x484   :  { %2469 = vmatprep.subr.mxu1 %v982_v30 }
 0x485   :  { %2470 = vmatpush3.msra.mxu1 %v982_v30  ;;  %v1181_v30 = vld [vmem:[%s3608_s6 + $0x30] sm:$0xff] }
 0x486   :  { %2471 = vmatprep.subr.mxu1 %v981_v31 }
 0x487   :  { %2472 = vmatpush3.msra.mxu1 %v981_v31  ;;  %v1176_v31 = vld [vmem:[%s3608_s6 + $0x8] sm:$0xff] }
 0x488   :  { %2474 = vmatmul.mubr.msk.f32.vlgmr.msra.gmra.mxu1 %vm985_vm13, %v2233_v29  ;;  %2476 = vmatprep.subr.mxu1 %v2628_v15 }
 0x489   :  { %2477 = vmatpush3.msra.mxu1 %v2628_v15  ;;  %2484 = vmatprep.mubr.msk.f32.mxu1 %vm985_vm13, %v2232_v57 }
 0x48a   :  { %2478 = vmatprep.subr.mxu1 %v2626_v27 }
 0x48b   :  { %2479 = vmatpush3.msra.mxu1 %v2626_v27 }
 0x48c   :  { %2480 = vmatprep.subr.mxu1 %v2632_v43 }
 0x48d   :  { %2481 = vmatpush3.msra.mxu1 %v2632_v43  ;;  %v1187_v43 = vld [vmem:[%s3608_s6 + $0x60] sm:$0xff] }
 0x48e   :  { %2482 = vmatprep.subr.mxu1 %v2630_v0  ;;  %v1216_v24 = vpack.c.bf16 %v1189_v32, %v1187_v43  ;;  %v2262_v32 = vld [vmem:[#allocation11] ss:$0 sm:$0xff] }
 0x48f   :  { %2483 = vmatpush3.msra.mxu1 %v2630_v0  ;;  %v1190_v0 = vld [vmem:[%s3608_s6 + $0x78] sm:$0xff] }
 0x490   :  { %2485 = vmatmul.mubr.msk.f32.vlgmr.msra.gmra.mxu1 %vm985_vm13, %v2233_v29  ;;  %v1217_v57 = vpack.c.bf16 %v1190_v0, %v1188_v12  ;;  %v1178_v29 = vld [vmem:[%s3608_s6 + $0x18] sm:$0xff] }
 0x491   :  { %1264 = vmatprep.mubr.bf16.mxu1 %v3604_v9  ;;  %v1184_v9 = vld [vmem:[%s3608_s6 + $0x48] sm:$0xff] }
 0x492   :  { %v1215_v61 = vpack.c.bf16 %v1186_v34, %v1184_v9  ;;  %1240 = vmatprep.subr.bf16.mxu1 %v1217_v57 }
 0x493   :  { %1241 = vmatpush1.bf16.msra.mxu1 %v1216_v24 }
 0x494   :  { %1242 = vmatprep.subr.bf16.mxu1 %v1215_v61 }
 0x497   :  { %1243 = vmatpush1.bf16.msra.mxu1 %v1214_v63 }
 0x498   :  { %1244 = vmatprep.subr.bf16.mxu1 %v1213_v58 }
 0x548   :  { %v2475_v42 = vpop.f32.mrf.mxu1 }
 0x54a   :  { %v1058_v40 = vpop.f32.mrf.mxu1 }
 0x550   :  { %v2486_v26 = vpop.f32.mrf.mxu1 }
 0x551   :  { %v1139_v15 = vadd.f32 1e-16, %v2486_v26  ;;  %v1212_v26 = vpack.c.bf16 %v1181_v30, %v1179_v62 }
 0x552   :  { %v1133_v27 = vpop.f32.mrf.mxu1 }
 0x553   :  { %v1134_v23 = vadd.f32 1e-16, %v1133_v27  ;;  %1149 = vperm.xlu1 %2624, %v1139_v15   ;;  %v1211_v15 = vpack.c.bf16 %v1178_v29, %v1176_v31  ;;  %v1175_v27 = vld [vmem:[%s3608_s6] sm:$0xff]  ;;  %1245 = vmatpush1.bf16.msra.mxu1 %v1212_v26  ;;  %v1332_v26 = vpop.f32.mrf.mxu0 }
 0x555   :  { %1144 = vperm.xlu0 %2623, %v1134_v23   ;;  %v1177_v23 = vld [vmem:[%s3608_s6 + $0x10] sm:$0xff]  ;;  %1246 = vmatprep.subr.bf16.mxu1 %v1211_v15  ;;  %v1207_v15 = vld [vmem:[%s3610_s20] sm:$0x3] }
 0x556   :  { %v1210_v12 = vpack.c.bf16 %v1177_v23, %v1175_v27 }
 0x558   :  { %1247 = vmatpush1.bf16.msra.mxu1 %v1210_v12  ;;  %v1334_v12 = vpop.f32.mrf.mxu0 }
 0x559   :  { %2487 = vmatprep.subr.mxu1 %v3605_v60 }
 0x5ce   :  { %v1150_v0 = vpop.permute.xlu1 %1149 }
 0x5cf   :  { %2633 = vrcp.f32 %v1150_v0 }
 0x5d0   :  { %v1145_v43 = vpop.permute.xlu0 %1144 }
 0x5d1   :  { %2635 = vrcp.f32 %v1145_v43 }
 0x5dc   :  { %v2634_v57 = vpop.eup %2633 }
 0x5dd   :  { %v1155_v9 = vmul.f32 %v2634_v57, %v2475_v42  ;;  %v3353_v42 = vsub.s32 0, %v3320_v41 }
 0x5de   :  { %v2636_v34 = vpop.eup %2635 }
 0x5df   :  { %v1164_v24 = vadd.f32 %v2262_v32, %v1155_v9  ;;  %v1153_v61 = vmul.f32 %v2636_v34, %v1058_v40  ;;  %v1208_v40 = vld [vmem:[%s3609_s12] sm:$0x3]  ;;  %v1222_v23 = vrot.slane %v1207_v15, %v3353_v42 }
 0x5e0   :  { %v1288_v27 = vrot.slane %v1208_v40, %v3353_v42 }
 0x5e1   :  { %v1169_v59 = vmul.f32 1.442695, %v1164_v24  ;;  %v1163_v28 = vadd.f32 %v2262_v32, %v1153_v61  ;;  %vm1166_vm2 = vcmp.gt.f32.partialorder %v1164_v24, 0.0  ;;  %v1336_v32 = vpop.f32.mrf.mxu0 }
 0x5e2   :  { %v1333_v43 = vadd.f32 %v1332_v26, %v1288_v27  ;;  %v1337_v61 = vadd.f32 %v1336_v32, %v1288_v27 }
 0x5e3   :  { %v1167_v1 = vmul.f32 1.442695, %v1163_v28  ;;  %2637 = vpow2.f32 %v1169_v59  ;;  %vm1165_vm15 = vcmp.gt.f32.partialorder %v1163_v28, 0.0 }
 0x5e5   :  { %2639 = vpow2.f32 %v1167_v1 }
 0x5f0   :  { %v2638_v25 = vpop.eup %2637 }
 0x5f1   :  { %v2264_v63 = vadd.f32 -1.0, %v2638_v25 }
 0x5f2   :  { %v2640_v58 = vpop.eup %2639 }
 0x5f3   :  { %v2263_v62 = vadd.f32 -1.0, %v2640_v58  ;;  %v1174_v31 = vsel %vm1166_vm2, %v1164_v24, %v2264_v63 }
 0x5f5   :  { %v1173_v30 = vsel %vm1165_vm15, %v1163_v28, %v2263_v62 }
 0x5f6   :  { %v1209_v29 = vpack.c.bf16 %v1174_v31, %v1173_v30  ;;  %v3360_v31 = vsub.s32 1, %v3320_v41 }
 0x5f8   :  { %2265 = vmatmul.mubr.msk.bf16.vlgmr.msra.gmra.mxu1 %vm656_vm1, %v1209_v29  ;;  %v1292_v29 = vrot.slane %v1208_v40, %v3360_v31  ;;  %v1226_v26 = vrot.slane %v1207_v15, %v3360_v31 }
 0x5f9   :  { %2491 = vmatprep.mubr.msk.f32.mxu1 %vm2851_vm0, %v3605_v60 }
 0x5fa   :  { %v1335_v27 = vadd.f32 %v1334_v12, %v1292_v29  ;;  %v1475_v12 = vld [vmem:[%s3611_s27 + $0x30] sm:$0xff] }
 0x6b8   :  { %v1266_v0 = vpop.f32.mrf.mxu1 }
 0x6b9   :  { %v1267_v57 = vadd.f32 %v1266_v0, %v1222_v23 }
 0x6ba   :  { %v1268_v9 = vpop.f32.mrf.mxu1 }
 0x6bb   :  { %v1341_v34 = vadd.f32 %v1333_v43, %v1267_v57  ;;  %v1269_v43 = vadd.f32 %v1268_v9, %v1226_v26  ;;  %v1476_v9 = vld [vmem:[%s3611_s27 + $0x38] sm:$0xff] }
 0x6bc   :  { %v1270_v24 = vpop.f32.mrf.mxu1 }
 0x6bd   :  { %v2267_v59 = vmul.f32 -1.442695, %v1341_v34  ;;  %v1271_v28 = vadd.f32 %v1270_v24, %v1222_v23  ;;  %v1338_v23 = vpop.f32.mrf.mxu0 }
 0x6be   :  { %v1272_v32 = vpop.f32.mrf.mxu1  ;;  %v1339_v34 = vadd.f32 %v1338_v23, %v1292_v29  ;;  %v1472_v29 = vld [vmem:[%s3611_s27 + $0x18] sm:$0xff] }
 0x6bf   :  { %2641 = vpow2.f32 %v2267_v59  ;;  %v1342_v1 = vadd.f32 %v1337_v61, %v1271_v28  ;;  %v1273_v59 = vadd.f32 %v1272_v32, %v1226_v26 }
 0x6c1   :  { %v2268_v25 = vmul.f32 -1.442695, %v1342_v1 }
 0x6c3   :  { %2643 = vpow2.f32 %v2268_v25  ;;  %v1473_v25 = vld [vmem:[%s3611_s27 + $0x20] sm:$0xff] }
 0x6cc   :  { %v2642_v63 = vpop.eup %2641 }
 0x6cd   :  { %v1349_v58 = vadd.f32 1.0, %v2642_v63  ;;  %v1481_v63 = vpack.c.bf16 %v1476_v9, %v1475_v12 }
 0x6cf   :  { %2645 = vrcp.f32 %v1349_v58  ;;  %v1474_v58 = vld [vmem:[%s3611_s27 + $0x28] sm:$0xff]  ;;  %2495 = vmatpush3.bf16.msra.mxu0 %v1481_v63 }
 0x6d0   :  { %v2644_v62 = vpop.eup %2643  ;;  %2496 = vmatprep.subr.bf16.mxu0 %v3605_v60 }
 0x6d1   :  { %v1350_v30 = vadd.f32 1.0, %v2644_v62  ;;  %v1480_v62 = vpack.c.bf16 %v1474_v58, %v1473_v25  ;;  %v273_v58 = vld [vmem:[%s3612_s16] sm:$0xff] }
 0x6d3   :  { %2647 = vrcp.f32 %v1350_v30  ;;  %v1471_v30 = vld [vmem:[%s3611_s27 + $0x10] sm:$0xff]  ;;  %2497 = vmatpush3.bf16.msra.mxu0 %v1480_v62 }
 0x6d4   :  { %v1479_v26 = vpack.c.bf16 %v1472_v29, %v1471_v30  ;;  %2498 = vmatprep.subr.bf16.mxu0 %v3605_v60  ;;  %v2236_v62 = vld [vmem:[#allocation5] ss:$0 sm:$0xff] }
 0x6d5   :  { %vm292_vm4 = vcmp.eq.s32.totalorder %v2236_v62, %v3320_v41 }
 0x6d7   :  { %2499 = vmatpush3.bf16.msra.mxu0 %v1479_v26 }
 0x6d8   :  { %2500 = vmatprep.subr.bf16.mxu0 %v3605_v60 }
 0x6dc   :  { %v2646_v0 = vpop.eup %2645 }
 0x6dd   :  { %v1355_v57 = vmul.f32 %v2646_v0, %v1335_v27  ;;  %v1470_v27 = vld [vmem:[%s3611_s27 + $0x8] sm:$0xff]  ;;  %v1361_v32 = vsub.f32 1.0, %v2646_v0 }
 0x6df   :  { %v1357_v24 = vadd.f32 %v1355_v57, %v1269_v43 }
 0x6e0   :  { %v2648_v61 = vpop.eup %2647 }
 0x6e1   :  { %2649 = vtanh.f32 %v1357_v24  ;;  %v1356_v28 = vmul.f32 %v2648_v61, %v1339_v34 }
 0x6e3   :  { %v1358_v1 = vadd.f32 %v1356_v28, %v1273_v59  ;;  %v1362_v59 = vsub.f32 1.0, %v2648_v61 }
 0x6e5   :  { %2651 = vtanh.f32 %v1358_v1 }
 0x6ee   :  { %v2650_v40 = vpop.eup %2649 }
 0x6ef   :  { %1365 = vrot.lane.b32.xlu0 %v2650_v40, %s2853_s4 }
 0x6f2   :  { %v2652_v15 = vpop.eup %2651 }
 0x6f3   :  { %1367 = vrot.lane.b32.xlu1 %v2652_v15, %s2853_s4  ;;  %1375 = vrot.lane.b32.xlu0 %v3228_v13, %s2853_s4  ;;  %v1469_v13 = vld [vmem:[%s3611_s27] sm:$0xff] }
 0x6f4   :  { %v1478_v23 = vpack.c.bf16 %v1470_v27, %v1469_v13 }
 0x6f6   :  { %2501 = vmatpush3.bf16.msra.mxu0 %v1478_v23 }
 0x6f7   :  { %1377 = vrot.lane.b32.xlu1 %v3224_v56, %s2853_s4 }
 0x761   :  { %v1366_v56 = vpop.permute.xlu0 %1365 }
 0x762   :  { %v1371_v24 = vmul.f32 %v1366_v56, %v1361_v32 }
 0x765   :  { %v1368_v43 = vpop.permute.xlu1 %1367  ;;  %v1376_v57 = vpop.permute.xlu0 %1375 }
 0x766   :  { %v1381_v34 = vmul.f32 %v2646_v0, %v1376_v57  ;;  %v1372_v1 = vmul.f32 %v1368_v43, %v1362_v59  ;;  %v274_v0 = vld [vmem:[%s3612_s16 + $0x8] sm:$0xff] }
 0x768   :  { %v1383_v40 = vadd.f32 %v1381_v34, %v1371_v24 }
 0x769   :  { %v1378_v28 = vpop.permute.xlu1 %1377 }
 0x76a   :  { %v1382_v15 = vmul.f32 %v2648_v61, %v1378_v28  ;;  %v1385_v9 = vmax.f32 %v1383_v40, 0.0  ;;  %v3390_v61 = vsel %vm292_vm4, 1.0, %v3605_v60 }
 0x76c   :  { %v1384_v12 = vadd.f32 %v1382_v15, %v1372_v1 }
 0x76e   :  { %v1386_v25 = vmax.f32 %v1384_v12, 0.0 }
 0x770   :  { %1391 = vrot.lane.b32.xlu1 %v1386_v25, %s2853_s4  ;;  %v1477_v63 = vpack.c.bf16 %v1386_v25, %v1385_v9 }
 0x772   :  { %1483 = vrot.lane.b32.xlu0 %v1477_v63, %s2853_s4 }
 0x774   :  { %276 = vperm.xlu1 %2624, %v273_v58  }
 0x776   :  { %1389 = vrot.lane.b32.xlu0 %v1385_v9, %s2853_s4 }
 0x77a   :  { %279 = vperm.xlu0 %2623, %v274_v0  }
 0x7e2   :  { %v1392_v30 = vpop.permute.xlu1 %1391 }
 0x7e3   :  { %2488 = vmatpush3.msra.mxu1 %v1392_v30 }
 0x7e4   :  { %v1484_v29 = vpop.permute.xlu0 %1483  ;;  %2489 = vmatprep.subr.mxu1 %v3605_v60 }
 0x7e5   :  { %2503 = vmatmul.mubr.msk.bf16.vlgmr.msra.gmra.mxu0 %vm656_vm1, %v1484_v29 }
 0x7e8   :  { %v1390_v26 = vpop.permute.xlu0 %1389 }
 0x7e9   :  { %2490 = vmatpush3.msra.mxu1 %v1390_v26 }
 0x7ea   :  { %2492 = vmatmul.mubr.msk.f32.vlgmr.msra.gmra.mxu1 %vm382_vm3, %v3390_v61 }
 0x7ef   :  { %v277_v13 = vpop.permute.xlu1 %276 }
 0x7f0   :  { %vm281_vm5 = vcmp.eq.s32.totalorder %v277_v13, %v3218_v2 }
 0x7f1   :  { %v3396_v27 = vsel %vm281_vm5, 1.0, %v3605_v60 }
 0x7f5   :  { %v280_v23 = vpop.permute.xlu0 %279 }
 0x7f6   :  { %vm282_vm6 = vcmp.eq.s32.totalorder %v280_v23, %v3218_v2 }
 0x7f7   :  { %v3400_v41 = vsel %vm282_vm6, 1.0, %v3605_v60 }
 0x8a5   :  { %v3402_v56 = vpop.f32.mrf.mxu0 }
 0x8a7   :  { %v2504_v43 = vpop.f32.mrf.mxu0 }
 0x8a9   :  { %v3404_v57 = vpop.f32.mrf.mxu0 }
 0x8aa   :  { %v1464_v34 = vpop.f32.mrf.mxu1 }
 0x8ab   :  { %v1468_v24 = vmax.f32 %v1464_v34, 0.0   ;;  %v2505_v59 = vpop.f32.mrf.mxu0 }
 0x8ac   :  { %v2493_v28 = vpop.f32.mrf.mxu1 }
 0x8ad LB: > { %v1596_v2 = vpack.c.bf16 %v3085_v22, %v3082_v21  ;;  %v3565_v60 = vmov 0.0   ;;  %v1595_v1 = vpack.c.bf16 %v3079_v20, %v3076_v19  ;;  %vm2855_vm7 = vmmov 0   ;;  %v3616_v3 = vld [vmem:[#allocation29_spill] sm:$0xff]  ;;  %s2857_s22 = smov 64   ;;  %s1590_s18 = sadd.s32 1, %s2811_s18   ;;  %s2811_s18 = sphi %s3410_s18, %s1590_s18   ;;  %v2807_v24 = vphi %v1468_v24, %v3637_v24  }
 0x8ae   : > { %2506 = vmatprep.subr.bf16.mxu0 %v3565_v60  ;;  %2514 = vmatprep.mubr.msk.bf16.mxu0 %vm2855_vm7, %v3565_v60  ;;  %v1594_v40 = vpack.c.bf16 %v3073_v18, %v3070_v17  ;;  %v1593_v15 = vpack.c.bf16 %v3067_v16, %v3062_v14  ;;  %v3434_v12 = vpack.c.bf16 %v2807_v24, %v2807_v24  ;;  %vm1640_vm8 = vcmask 15360   ;;  %p1587_p2 = scmp.ge.s32.totalorder %s1590_s18, 7  }
 0x8af   : > { %2507 = vmatpush3.bf16.msra.mxu0 %v1596_v2  ;;  %2520 = vmatprep.mubr.msk.f32.mxu1 %vm1640_vm8, %v3396_v27  ;;  %vm1647_vm9 = vcmask 1041408   ;;  %v3613_v58 = vpack.c.bf16 %v3055_v11, %v3052_v10  ;;  %v3614_v62 = vpack.c.bf16 %v3047_v8, %v3044_v7  ;;  %v3615_v30 = vpack.c.bf16 %v3041_v6, %v3038_v5  ;;  %v2116_v5 = vld [vmem:[%s3001_s9 + $0x18] sm:$0xff] (%p1587_p2)  ;;  %v2113_v7 = vld [vmem:[%s3001_s9] sm:$0xff] (%p1587_p2)  ;;  %v2114_v8 = vld [vmem:[%s3001_s9 + $0x8] sm:$0xff] (%p1587_p2) }
 0x8b0   : > { %2508 = vmatprep.subr.bf16.mxu0 %v3565_v60  ;;  %v3617_v29 = vpack.c.bf16 %v3035_v4, %v3616_v3  ;;  %v3618_v32 = vpack.c.bf16 %v3404_v57, %v3402_v56  ;;  %v2856_v26 = vmov 0   ;;  %v2115_v4 = vld [vmem:[%s3001_s9 + $0x10] sm:$0xff] (%p1587_p2)  ;;  %v2122_v10 = vpack.c.bf16 (%p1587_p2), %v2114_v8, %v2113_v7  ;;  %v2283_v14 = vld [vmem:[#allocation2] ss:$0 sm:$0xff] (%p1587_p2) }
 0x8b1   : > { %2653 = vset.pattern.permute.xlu0 %v2856_v26  ;;  %2654 = vset.pattern.permute.xlu1 %v2856_v26  ;;  %v2123_v6 = vpack.c.bf16 (%p1587_p2), %v2116_v5, %v2115_v4 }
 0x8b3   : > { %2509 = vmatpush3.bf16.msra.mxu0 %v1595_v1 }
 0x8b4   : > { %2510 = vmatprep.subr.bf16.mxu0 %v3565_v60 }
 0x8b7   : > { %2511 = vmatpush3.bf16.msra.mxu0 %v1594_v40 }
 0x8b8   : > { %2512 = vmatprep.subr.bf16.mxu0 %v3565_v60 }
 0x8bb   : > { %2513 = vmatpush3.bf16.msra.mxu0 %v1593_v15 }
 0x8bc   : > { %2535 = vmatprep.subr.mxu0 %v3565_v60 }
 0x8be   : > { %2515 = vmatmul.mubr.msk.bf16.vlgmr.msra.gmra.mxu0 %vm656_vm1, %v3434_v12 }
 0x8bf   : > { %2539 = vmatprep.mubr.msk.f32.mxu0 %vm2855_vm7, %v3565_v60 }
 0x97e   : > { %v1634_v9 = vpop.f32.mrf.mxu0 }
 0x97f   : > { %2518 = vmatprep.subr.msk.mxu1 %vm1647_vm9, %v1634_v9 }
 0x980   : > { %v2516_v25 = vpop.f32.mrf.mxu0  ;;  %2519 = vmatpush3.msk.msra.mxu1 %vm1647_vm9, %v1634_v9 }
 0x981   : > { %2521 = vmatmul.mubr.msk.f32.vlgmr.msra.gmra.mxu1 %vm1640_vm8, %v3400_v41  ;;  %2523 = vmatprep.subr.bf16.mxu1 %v3565_v60 }
 0x982   : > { %v1637_v63 = vpop.f32.mrf.mxu0  ;;  %2524 = vmatpush3.bf16.msra.mxu1 %v3613_v58  ;;  %2531 = vmatprep.mubr.msk.bf16.mxu1 %vm2855_vm7, %v3565_v60 }
 0x983   : > { %2525 = vmatprep.subr.bf16.mxu1 %v3565_v60 }
 0x984   : > { %v2517_v0 = vpop.f32.mrf.mxu0 }
 0x986   : > { %2526 = vmatpush3.bf16.msra.mxu1 %v3614_v62 }
 0x987   : > { %2527 = vmatprep.subr.bf16.mxu1 %v3565_v60 }
 0x98a   : > { %2528 = vmatpush3.bf16.msra.mxu1 %v3615_v30 }
 0x98b   : > { %2529 = vmatprep.subr.bf16.mxu1 %v3565_v60 }
 0x98e   : > { %2530 = vmatpush3.bf16.msra.mxu1 %v3617_v29 }
 0x98f   : > { %2542 = vmatprep.subr.mxu1 %v3565_v60 }
 0x991   : > { %2532 = vmatmul.mubr.msk.bf16.vlgmr.msra.gmra.mxu1 %vm656_vm1, %v3618_v32 }
 0x992   : > { %2546 = vmatprep.mubr.msk.f32.mxu1 %vm2855_vm7, %v3565_v60 }
 0xa41   : > { %v2522_v13 = vpop.f32.mrf.mxu1 }
 0xa43   : > { %v1717_v23 = vpop.f32.mrf.mxu1 }
 0xa51   : > { %v1763_v43 = vpop.f32.mrf.mxu1 }
 0xa52   : > { %v1764_v34 = vadd.f32 %v1763_v43, %v1717_v23 }
 0xa53   : > { %v2533_v59 = vpop.f32.mrf.mxu1 }
 0xa54   : > { %v1772_v28 = vmul.f32 0.01, %v1764_v34  ;;  %vm1770_vm11 = vcmp.ge.f32.partialorder %v1764_v34, 0.0 }
 0xa55   : > { %v1766_v2 = vpop.f32.mrf.mxu1 }
 0xa56   : > { %v1767_v1 = vadd.f32 %v2522_v13, %v1766_v2  ;;  %v1774_v15 = vsel %vm1770_vm11, %v1764_v34, %v1772_v28  ;;  %v3619_v2 = vmov 0.0  }
 0xa57   : > { %v2534_v40 = vpop.f32.mrf.mxu1  ;;  %v1776_v63 = vsel %vm874_vm10, %v1774_v15, -inf }
 0xa58   : > { %vm1771_vm12 = vcmp.ge.f32.partialorder %v1767_v1, 0.0  ;;  %v1773_v9 = vmul.f32 0.01, %v1767_v1 }
 0xa5a   : > { %v1775_v25 = vsel %vm1771_vm12, %v1767_v1, %v1773_v9 }
 0xa5b   : > { %v1777_v58 = vsel %vm874_vm10, %v1775_v25, -inf }
 0xa5c   : > { %v1778_v0 = vmax.f32 %v1776_v63, %v1777_v58  ;;  %v2032_v63 = vpack.c.bf16 %v3181_v54, %v3175_v52  ;;  %v2031_v58 = vpack.c.bf16 %v3172_v51, %v3166_v49 }
 0xa5e   : > { %v1779_v62 = vrot.slane %v1778_v0, 4 }
 0xa60   : > { %v1780_v30 = vmax.f32 %v1778_v0, %v1779_v62  ;;  %v2030_v0 = vpack.c.bf16 %v3169_v50, %v3163_v48  ;;  %v1969_v62 = vpack.c.bf16 %v3133_v38, %v3127_v36 }
 0xa62   : > { %v1781_v29 = vrot.slane %v1780_v30, 2 }
 0xa64   : > { %v1782_v32 = vmax.f32 %v1780_v30, %v1781_v29  ;;  %v2029_v30 = vpack.c.bf16 %v3160_v47, %v3154_v45  ;;  %v2028_v29 = vpack.c.bf16 %v3157_v46, %v3151_v44 }
 0xa66   : > { %v1783_v23 = vrot.slane %v1782_v32, 1 }
 0xa68   : > { %v1784_v43 = vmax.f32 %v1782_v32, %v1783_v23  ;;  %v1968_v23 = vpack.c.bf16 %v3124_v35, %v3118_v33 }
 0xa6a   : > { %v1785_v59 = vsub.f32 %v1774_v15, %v1784_v43  ;;  %v1786_v60 = vsub.f32 %v1775_v25, %v1784_v43  ;;  %v2033_v25 = vpack.c.bf16 %v3184_v55, %v3178_v53  ;;  %v3620_v43 = vld [vmem:[#allocation39_spill] sm:$0xff] }
 0xa6c   : > { %v1789_v3 = vmul.f32 1.442695, %v1786_v60  ;;  %v1787_v13 = vmul.f32 1.442695, %v1785_v59  ;;  %v3621_v59 = vld [vmem:[#allocation40_spill] sm:$0xff] }
 0xa6e   : > { %2655 = vpow2.f32 %v1789_v3 }
 0xa6f   : > { %2657 = vpow2.f32 %v1787_v13  ;;  %v1967_v13 = vpack.c.bf16 %v3621_v59, %v3620_v43 }
 0xa7b   : > { %v2656_v34 = vpop.eup %2655 }
 0xa7c   : > { %1798 = vperm.xlu0 %2653, %v2656_v34   ;;  %2543 = vmatpush3.msra.mxu1 %v2656_v34  ;;  %v2658_v28 = vpop.eup %2657  ;;  %v3622_v34 = vld [vmem:[#allocation42_spill] sm:$0xff] }
 0xa7d   : > { %2544 = vmatprep.subr.mxu1 %v3619_v2 }
 0xa7e   : > { %2545 = vmatpush3.msra.mxu1 %v2658_v28 }
 0xa7f   : > { %2547 = vmatmul.mubr.msk.f32.vlgmr.msra.gmra.mxu1 %vm382_vm3, %v3390_v61  ;;  %2053 = vmatprep.subr.bf16.mxu1 %v2033_v25  ;;  %v3629_v25 = vld [vmem:[#allocation37_spill] sm:$0xff] }
 0xa80   : > { %1793 = vperm.xlu0 %2653, %v2658_v28   ;;  %2077 = vmatprep.mubr.bf16.mxu1 %v2856_v26  ;;  %v3623_v28 = vld [vmem:[#allocation44_spill] sm:$0xff] }
 0xa81   : > { %2054 = vmatpush1.bf16.msra.mxu1 %v2032_v63 }
 0xa82   : > { %2055 = vmatprep.subr.bf16.mxu1 %v2031_v58  ;;  %v3630_v58 = vld [vmem:[#allocation32_spill] sm:$0xff] }
 0xa84   : > { %2103 = vrot.lane.b32.xlu0 %v2807_v24, %s2857_s22 }
 0xa85   : > { %2056 = vmatpush1.bf16.msra.mxu1 %v2030_v0  ;;  %v3631_v0 = vld [vmem:[#allocation34_spill] sm:$0xff] }
 0xa86   : > { %2057 = vmatprep.subr.bf16.mxu1 %v2029_v30  ;;  %v3633_v30 = vld [vmem:[#allocation33_spill] sm:$0xff] }
 0xa89   : > { %2058 = vmatpush1.bf16.msra.mxu1 %v2028_v29 }
 0xaf7   : > { %v1799_v1 = vpop.permute.xlu0 %1798 }
 0xaf8   : > { %v1802_v32 = vmul.f32 %v1799_v1, %v3404_v57  ;;  %v3624_v1 = vld [vmem:[#allocation41_spill] sm:$0xff] }
 0xafa   : > { %2536 = vmatpush3.msra.mxu0 %v1802_v32  ;;  %v3625_v32 = vld [vmem:[#allocation43_spill] sm:$0xff] }
 0xafb   : > { %v1794_v60 = vpop.permute.xlu0 %1793  ;;  %2537 = vmatprep.subr.mxu0 %v3619_v2  ;;  %v2027_v2 = vpack.c.bf16 %v3623_v28, %v3622_v34  ;;  %v3634_v28 = vld [vmem:[#allocation30_spill] sm:$0xff] }
 0xafc   : > { %v1801_v3 = vmul.f32 %v1794_v60, %v3402_v56  ;;  %v2026_v60 = vpack.c.bf16 %v3625_v32, %v3624_v1 }
 0xafd   : > { %2059 = vmatprep.subr.bf16.mxu1 %v2027_v2 }
 0xafe   : > { %2538 = vmatpush3.msra.mxu0 %v1801_v3  ;;  %v3626_v3 = vld [vmem:[#allocation36_spill] sm:$0xff]  ;;  %2060 = vmatpush1.bf16.msra.mxu1 %v2026_v60 }
 0xaff   : > { %2540 = vmatmul.mubr.msk.f32.vlgmr.msra.gmra.mxu0 %vm382_vm3, %v3390_v61 }
 0xb00   : > { %2017 = vmatprep.mubr.bf16.mxu0 %v2856_v26  ;;  %v1970_v26 = vpack.c.bf16 %v3136_v39, %v3130_v37 }
 0xb01   : > { %2281 = vmatmul.mubr.msk.bf16.vlgmr.msra.gmra.mxu1 %vm656_vm1, %v3434_v12 }
 0xb02   : > { %1993 = vmatprep.subr.bf16.mxu0 %v1970_v26  ;;  %v1964_v26 = vpack.c.bf16 %v3631_v0, %v3630_v58  ;;  %v3636_v58 = vld [vmem:[#allocation45_spill] sm:$0xff] }
 0xb03   : > { %1994 = vmatpush1.bf16.msra.mxu0 %v1969_v62  ;;  %v3632_v62 = vld [vmem:[#allocation31_spill] sm:$0xff]  ;;  %v1975_v0 = vrot.slane %v3636_v58, %v3353_v42 }
 0xb04   : > { %1995 = vmatprep.subr.bf16.mxu0 %v1968_v23  ;;  %v1963_v29 = vpack.c.bf16 %v3633_v30, %v3632_v62 }
 0xb07   : > { %1996 = vmatpush1.bf16.msra.mxu0 %v1967_v13 }
 0xb3f   : > { %v1939_v40 = vpop.f32.mrf.mxu1 }
 0xb40   : > { %v1940_v15 = vadd.f32 1e-16, %v1939_v40  ;;  %v3627_v40 = vld [vmem:[#allocation38_spill] sm:$0xff] }
 0xb41   : > { %v2548_v9 = vpop.f32.mrf.mxu1 }
 0xb42   : > { %1945 = vperm.xlu1 %2654, %v1940_v15   ;;  %v1966_v15 = vpack.c.bf16 %v3627_v40, %v3626_v3  ;;  %v3628_v9 = vld [vmem:[#allocation35_spill] sm:$0xff] }
 0xb43   : > { %v1965_v63 = vpack.c.bf16 %v3629_v25, %v3628_v9  ;;  %v3635_v25 = vld [vmem:[#allocation46_spill] sm:$0xff] }
 0xb44   : > { %1997 = vmatprep.subr.bf16.mxu0 %v1966_v15 }
 0xb45   : > { %1998 = vmatpush1.bf16.msra.mxu0 %v1965_v63  ;;  %v2038_v63 = vrot.slane %v3635_v25, %v3353_v42 }
 0xb46   : > { %1999 = vmatprep.subr.bf16.mxu0 %v1964_v26 }
 0xb49   : > { %2000 = vmatpush1.bf16.msra.mxu0 %v1963_v29 }
 0xbbd   : > { %v1946_v23 = vpop.permute.xlu1 %1945 }
 0xbbe   : > { %2659 = vrcp.f32 %v1946_v23 }
 0xbbf   : > { %v1869_v43 = vpop.f32.mrf.mxu0 }
 0xbc1   : > { %v2541_v59 = vpop.f32.mrf.mxu0  ;;  %v2079_v40 = vpop.f32.mrf.mxu1 }
 0xbc2   : > { %v2080_v26 = vadd.f32 %v2079_v40, %v2038_v63 }
 0xbc3   : > { %v2081_v15 = vpop.f32.mrf.mxu1 }
 0xbc5   : > { %v2083_v24 = vpop.f32.mrf.mxu1 }
 0xbc7   : > { %v2084_v9 = vpop.f32.mrf.mxu1 }
 0xbc8   : > { %v2104_v9 = vpop.permute.xlu0 %2103 }
 0xbcb   : > { %v2660_v13 = vpop.eup %2659 }
 0xbcc   : > { %v1949_v34 = vmul.f32 %v2660_v13, %v1869_v43 }
 0xbce   : > { %v1956_v2 = vadd.f32 %v3634_v28, %v1949_v34 }
 0xbd0   : > { %v1958_v1 = vmul.f32 1.442695, %v1956_v2  ;;  %vm1957_vm13 = vcmp.gt.f32.partialorder %v1956_v2, 0.0 }
 0xbd2   : > { %2661 = vpow2.f32 %v1958_v1  ;;  %v1979_v1 = vrot.slane %v3636_v58, %v3360_v31 }
 0xbdf   : > { %v2662_v12 = vpop.eup %2661 }
 0xbe0   : > { %v2279_v32 = vadd.f32 -1.0, %v2662_v12 }
 0xbe2   : > { %v1961_v60 = vsel %vm1957_vm13, %v1956_v2, %v2279_v32  ;;  %v2042_v2 = vrot.slane %v3635_v25, %v3360_v31 }
 0xbe3   : > { %v1962_v3 = vpack.c.bf16 %v1961_v60, %v1961_v60 }
 0xbe4   : > { %v2082_v12 = vadd.f32 %v2081_v15, %v2042_v2  ;;  %v3638_v15 = vmov (%p1587_p2), 0.0  }
 0xbe5   : > { %2280 = vmatmul.mubr.msk.bf16.vlgmr.msra.gmra.mxu0 %vm656_vm1, %v1962_v3  ;;  %2549 = vmatprep.subr.bf16.mxu0 (%p1587_p2), %v3638_v15 }
 0xbe6   :  { %2557 = vmatprep.mubr.msk.bf16.mxu0 (%p1587_p2), %vm2851_vm0, %v3638_v15  ;;  %vm2176_vm0 = vcmask (%p1587_p2), 1024  }
 0xca5   : > { %v2019_v62 = vpop.f32.mrf.mxu0 }
 0xca6   : > { %v2020_v30 = vadd.f32 %v2019_v62, %v1975_v0 }
 0xca7   : > { %v2021_v29 = vpop.f32.mrf.mxu0 }
 0xca8   : > { %v2086_v23 = vadd.f32 %v2080_v26, %v2020_v30  ;;  %v2022_v3 = vadd.f32 %v2021_v29, %v1979_v1  ;;  %v2119_v29 = vld [vmem:[%s3001_s9 + $0x30] sm:$0xff] (%p1587_p2) }
 0xca9   : > { %v2023_v43 = vpop.f32.mrf.mxu0 }
 0xcaa   : > { %v2282_v59 = vmul.f32 -1.442695, %v2086_v23 }
 0xcab   : > { %v2024_v13 = vpop.f32.mrf.mxu0 }
 0xcac   : > { %2663 = vpow2.f32 %v2282_v59  ;;  %v2120_v59 = vld [vmem:[%s3001_s9 + $0x38] sm:$0xff] (%p1587_p2)  ;;  %v2117_v13 = vld [vmem:[%s3001_s9 + $0x20] sm:$0xff] (%p1587_p2) }
 0xcb9   : > { %v2664_v34 = vpop.eup %2663 }
 0xcba   : > { %v2090_v28 = vadd.f32 1.0, %v2664_v34  ;;  %v2125_v34 = vpack.c.bf16 (%p1587_p2), %v2120_v59, %v2119_v29 }
 0xcbc   : > { %2665 = vrcp.f32 %v2090_v28  ;;  %v2118_v28 = vld [vmem:[%s3001_s9 + $0x28] sm:$0xff] (%p1587_p2)  ;;  %2550 = vmatpush3.bf16.msra.mxu0 (%p1587_p2), %v2125_v34 }
 0xcbd   :  { %v2124_v2 = vpack.c.bf16 (%p1587_p2), %v2118_v28, %v2117_v13  ;;  %2551 = vmatprep.subr.bf16.mxu0 (%p1587_p2), %v3638_v15 }
 0xcc0   :  { %2552 = vmatpush3.bf16.msra.mxu0 (%p1587_p2), %v2124_v2 }
 0xcc1   :  { %2553 = vmatprep.subr.bf16.mxu0 (%p1587_p2), %v3638_v15 }
 0xcc4   :  { %2554 = vmatpush3.bf16.msra.mxu0 (%p1587_p2), %v2123_v6 }
 0xcc5   :  { %2555 = vmatprep.subr.bf16.mxu0 (%p1587_p2), %v3638_v15 }
 0xcc8   :  { %2556 = vmatpush3.bf16.msra.mxu0 (%p1587_p2), %v2122_v10 }
 0xcc9   : > { %v2666_v32 = vpop.eup %2665 }
 0xcca   : > { %v2093_v60 = vmul.f32 %v2666_v32, %v2082_v12  ;;  %v2096_v63 = vsub.f32 1.0, %v2666_v32  ;;  %v2106_v26 = vmul.f32 %v2666_v32, %v2104_v9 }
 0xccc   : > { %v2094_v40 = vadd.f32 %v2093_v60, %v2022_v3 }
 0xcce   : > { %2667 = vtanh.f32 %v2094_v40 }
 0xcdb   : > { %v2668_v24 = vpop.eup %2667 }
 0xcdc   : > { %2098 = vrot.lane.b32.xlu1 %v2668_v24, %s2857_s22 }
 0xd4e   : > { %v2099_v0 = vpop.permute.xlu1 %2098 }
 0xd4f   : > { %v2101_v62 = vmul.f32 %v2099_v0, %v2096_v63 }
 0xd51   : > { %v2107_v30 = vadd.f32 %v2106_v26, %v2101_v62 }
 0xd53   : > { %v2108_v23 = vmax.f32 %v2107_v30, 0.0 }
 0xd55   : > { %2110 = vrot.lane.b32.xlu1 %v2108_v23, %s2857_s22 }
 0xdc4   :  { %1589 = sbr.rel (!%p1587_p2) target bundleno = 2221 (0x8ad), region = 196 }
 0xdc7   : > { %v2111_v43 = vpop.permute.xlu1 %2110  }
 0xdc8   : > { %v3637_v24 = vmov %v2111_v43  ;;  %v2121_v11 = vpack.c.bf16 (%p1587_p2), %v2111_v43, %v2111_v43 }
 0xdca   :  { %2558 = vmatmul.mubr.msk.bf16.vlgmr.msra.gmra.mxu0 %vm656_vm1, %v2121_v11 }
 0xe8a   :  { %v2170_v16 = vpop.f32.mrf.mxu0 }
 0xe8b   :  { %v2171_v17 = vadd.f32 %v2283_v14, %v2170_v16 }
 0xe8c   :  { %v2559_v18 = vpop.f32.mrf.mxu0 }
 0xe8d   :  { %2177 = vst.msk [vmem:[%s3009_s17] sm:$0x3] %vm2176_vm0, %v2171_v17 }
 0xe8e   :  { %v2173_v19 = vpop.f32.mrf.mxu0 }
 0xe90   :  { %v2560_v20 = vpop.f32.mrf.mxu0 }
 0xe91   :  { %2182 = vsyncpa [#allocation4], 1 }
 0xe92   :  { %2183 = vsyncpa [#allocation6], 1 }
 0xe93   :  { %2184 = vsyncpa [#allocation9], 1 }
 0xe94   :  { %2185 = vsyncpa [#allocation12], 1 }

</bundles_post_ra>
